<compile_context>
chip_gen: v7x
topology: tpu7x:2x2x1
jax: 0.10.0
libtpu: 0.0.40
codegen_flags: <defaults>
</compile_context>

<pallas_src>
import functools

import jax
import jax.numpy as jnp
from jax.experimental import pallas as pl
from jax.experimental.pallas import tpu as pltpu

LANE = 128  # TPU lane width: pad filter/class dims to this for lane-dense ops.


def _round_up(n, m):
    return ((n + m - 1) // m) * m


def _conv_out_lengths(in_length, kernel_size, stride, num_layers):
    """Output length after each Conv1d, identical to the PyTorch module's math."""
    lens = []
    length = in_length
    for _ in range(num_layers):
        length = (length - kernel_size) // stride + 1
        lens.append(length)
    return lens


# ---------------------------------------------------------------------------
# Fused kernel: whole forward pass for ONE batch element (grid is over batch).
# ---------------------------------------------------------------------------
def _fused_forward_kernel(*refs, num_layers, kernel_size, stride, conv_out_lens):
    """Ref layout (see build_forward):
         refs[0]                      x         (L0, C0_pad)  channels-last
         refs[1 + 2i], refs[2 + 2i]   conv_w_i  (K, C_i, F_pad); conv_b_i (1, F_pad)
         refs[1+2L .. 4+2L]           fc1_w (L_last, F_pad, F_pad), fc1_b (1, F_pad),
                                      fc2_w (F_pad, N_pad),         fc2_b (1, N_pad)
         refs[5+2L]                   out       (1, N_pad)
         refs[6+2L ..]                VMEM scratch: conv-i activation (L_{i+1}, F_pad)
    """
    x_ref = refs[0]
    conv_refs = refs[1:1 + 2 * num_layers]
    fc1w_ref, fc1b_ref, fc2w_ref, fc2b_ref = refs[1 + 2 * num_layers:5 + 2 * num_layers]
    out_ref = refs[5 + 2 * num_layers]
    act_refs = refs[6 + 2 * num_layers:]

    src = x_ref                                               # (L_in, C) channels-last
    for i in range(num_layers):
        w_ref = conv_refs[2 * i]                              # (K, C_i, F_pad) tap-major
        b_ref = conv_refs[2 * i + 1]                          # (1, F_pad)
        l_out = conv_out_lens[i]
        f_pad = w_ref.shape[2]
        acc = jnp.zeros((l_out, f_pad), jnp.float32)
        # Conv1d as a sum of K tap matmuls on VMEM-resident activations.
        for k in range(kernel_size):
            x_k = src[pl.ds(k, l_out, stride=stride), :]      # strided VMEM read
            acc = acc + jnp.dot(x_k, w_ref[k],
                                preferred_element_type=jnp.float32)
        act_refs[i][...] = jnp.maximum(acc + b_ref[...], 0.0)  # bias + ReLU
        src = act_refs[i]
        # TODO(synk): Dropout(drop_p_conv) after each conv block is identity at inference.

    # fc_block: Dropout (inference identity) -> Linear -> Linear (no activation).
    # PyTorch's channel-major flatten is pre-folded into fc1_w, so fc1 is a sum of
    # one (1, F_pad) @ (F_pad, F_pad) matmul per remaining length position.
    a_last = src[...]                                         # (L_last, F_pad)
    h = fc1b_ref[...]                                         # (1, F_pad)
    for l in range(conv_out_lens[-1]):
        h = h + jnp.dot(a_last[l:l + 1, :], fc1w_ref[l],
                        preferred_element_type=jnp.float32)
    y = jnp.dot(h, fc2w_ref[...], preferred_element_type=jnp.float32) + fc2b_ref[...]
    out_ref[...] = y.astype(out_ref.dtype)                    # (1, N_pad) lane-dense store


# ---------------------------------------------------------------------------
# Parameters: PyTorch-shaped init + one-time repack/pad for the fused kernel.
# ---------------------------------------------------------------------------
def init_params(key, input_shape, num_classes, kernel_size, stride, filters, num_layers):
    """Deterministic synthetic parameters with exactly the PyTorch module's shapes."""
    _, in_c, length = input_shape
    outshape = _conv_out_lengths(length, kernel_size, stride, num_layers)[-1]
    params = {"convs": []}
    c_in = in_c
    for _ in range(num_layers):
        key, kw, kb = jax.random.split(key, 3)
        w = 0.05 * jax.random.normal(kw, (filters, c_in, kernel_size), jnp.float32)
        b = 0.05 * jax.random.normal(kb, (filters,), jnp.float32)
        params["convs"].append((w, b))
        c_in = filters
    key, k1, k2, k3, k4 = jax.random.split(key, 5)
    params["fc1_w"] = 0.05 * jax.random.normal(k1, (filters, outshape * filters), jnp.float32)
    params["fc1_b"] = 0.05 * jax.random.normal(k2, (filters,), jnp.float32)
    params["fc2_w"] = 0.05 * jax.random.normal(k3, (num_classes, filters), jnp.float32)
    params["fc2_b"] = 0.05 * jax.random.normal(k4, (num_classes,), jnp.float32)
    return params, outshape


def prepare_params(params, *, kernel_size, stride, filters, num_classes, outshape):
    """One-time repack: transpose to matmul-friendly layouts, zero-pad filter/class
    dims to 128 lanes, and fold PyTorch's channel-major flatten into fc1's weight."""
    f_pad = _round_up(filters, LANE)
    n_pad = _round_up(num_classes, LANE)
    prepped = {"convs": []}
    for i, (w, b) in enumerate(params["convs"]):
        filt, c_in, _k = w.shape
        w_taps = jnp.transpose(w, (2, 1, 0))                  # (K, C, F): tap k -> (C, F)
        c_pad = _round_up(c_in, 8) if i == 0 else f_pad       # later layers consume padded acts
        w_taps = jnp.pad(w_taps, ((0, 0), (0, c_pad - c_in), (0, f_pad - filt)))
        b_pad = jnp.pad(b, (0, f_pad - filt)).reshape(1, f_pad)
        prepped["convs"].append((w_taps, b_pad))
    # fc1: input index of the PyTorch weight is f * outshape + l (channel-major
    # flatten of an (F, L) activation).  Re-order rows to the kernel's
    # channels-last layout and store one (F_pad, F_pad) block per length position.
    w3 = params["fc1_w"].reshape(filters, filters, outshape)  # [out_j, f, l]
    w3 = jnp.transpose(w3, (2, 1, 0))                         # [l, f, out_j]
    w3 = jnp.pad(w3, ((0, 0), (0, f_pad - filters), (0, f_pad - filters)))
    prepped["fc1_w"] = w3                                     # (L_last, F_pad, F_pad)
    prepped["fc1_b"] = jnp.pad(params["fc1_b"], (0, f_pad - filters)).reshape(1, f_pad)
    prepped["fc2_w"] = jnp.pad(params["fc2_w"].T,
                               ((0, f_pad - filters), (0, n_pad - num_classes)))
    prepped["fc2_b"] = jnp.pad(params["fc2_b"], (0, n_pad - num_classes)).reshape(1, n_pad)
    return prepped, f_pad, n_pad


# ---------------------------------------------------------------------------
# Build the fused pallas_call + jitted wrapper.
# ---------------------------------------------------------------------------
def build_forward(prepped, *, batch, in_channels, in_length, num_classes,
                  kernel_size, stride, num_layers, f_pad, n_pad):
    conv_lens = tuple(_conv_out_lengths(in_length, kernel_size, stride, num_layers))
    c0_pad = prepped["convs"][0][0].shape[1]                  # padded input-channel count

    kernel = functools.partial(
        _fused_forward_kernel,
        num_layers=num_layers,
        kernel_size=kernel_size,
        stride=stride,
        conv_out_lens=conv_lens,
    )

    # x is tiled per batch element (leading dim squeezed); every weight is a single
    # full-extent block whose block index never changes across the grid, so it is
    # DMA'd once and stays resident in VMEM.
    in_specs = [pl.BlockSpec((None, in_length, c0_pad), lambda b: (b, 0, 0))]
    for w_taps, b_pad in prepped["convs"]:
        in_specs.append(pl.BlockSpec(w_taps.shape, lambda b: (0, 0, 0)))
        in_specs.append(pl.BlockSpec(b_pad.shape, lambda b: (0, 0)))
    in_specs += [
        pl.BlockSpec(prepped["fc1_w"].shape, lambda b: (0, 0, 0)),
        pl.BlockSpec(prepped["fc1_b"].shape, lambda b: (0, 0)),
        pl.BlockSpec(prepped["fc2_w"].shape, lambda b: (0, 0)),
        pl.BlockSpec(prepped["fc2_b"].shape, lambda b: (0, 0)),
    ]
    out_spec = pl.BlockSpec((None, 1, n_pad), lambda b: (b, 0, 0))
    scratch = [pltpu.VMEM((conv_lens[i], f_pad), jnp.float32)
               for i in range(num_layers)]

    fused = pl.pallas_call(
        kernel,
        out_shape=jax.ShapeDtypeStruct((batch, 1, n_pad), jnp.float32),
        grid_spec=pltpu.PrefetchScalarGridSpec(
            num_scalar_prefetch=0,
            grid=(batch,),
            in_specs=in_specs,
            out_specs=out_spec,
            scratch_shapes=scratch,
        ),
        compiler_params=pltpu.CompilerParams(
            dimension_semantics=("parallel",),   # v7x: shard the batch over both TCs
        ),
    )

    @jax.jit
    def forward(prepped_params, x_ncl):
        # Single layout op outside the kernel: PyTorch NCL -> channels-last NLC,
        # plus zero-padding of input channels to the prepped contraction width.
        x_nlc = jnp.transpose(x_ncl, (0, 2, 1))
        x_nlc = jnp.pad(x_nlc, ((0, 0), (0, 0), (0, c0_pad - in_channels)))
        args = [x_nlc]
        for w_taps, b_pad in prepped_params["convs"]:
            args += [w_taps, b_pad]
        args += [prepped_params["fc1_w"], prepped_params["fc1_b"],
                 prepped_params["fc2_w"], prepped_params["fc2_b"]]
        y = fused(*args)                                   # (B, 1, N_pad)
        return y.reshape(batch, n_pad)[:, :num_classes]    # drop lane padding

    return forward


# ---------------------------------------------------------------------------
if __name__ == "__main__":
    # Small hyperparameters consistent with the module's constructor.
    batch, in_channels, length = 2, 4, 64
    kernel_size, stride, filters, num_layers, num_classes = 5, 2, 32, 3, 3
    input_shape = (batch, in_channels, length)

    key = jax.random.PRNGKey(0)
    key, kx = jax.random.split(key)
    x = jax.random.normal(kx, input_shape, jnp.float32)       # NCL, like PyTorch

    params, outshape = init_params(key, input_shape, num_classes, kernel_size,
                                   stride, filters, num_layers)
    prepped, f_pad, n_pad = prepare_params(
        params, kernel_size=kernel_size, stride=stride, filters=filters,
        num_classes=num_classes, outshape=outshape)

    forward = build_forward(
        prepped, batch=batch, in_channels=in_channels, in_length=length,
        num_classes=num_classes, kernel_size=kernel_size, stride=stride,
        num_layers=num_layers, f_pad=f_pad, n_pad=n_pad)

    out = forward(prepped, x)
    out = jax.block_until_ready(out)
    assert out.shape == (batch, num_classes), out.shape
    print("KERNEL_OK")
</pallas_src>

<mosaic_0001>
module attributes {stable_mosaic.version = 11 : i64} {
  func.func @_fused_forward_kernel(%arg0: i32, %arg1: memref<1x64x8xf32, #tpu.memory_space<vmem>>, %arg2: memref<5x8x128xf32, #tpu.memory_space<vmem>>, %arg3: memref<1x128xf32, #tpu.memory_space<vmem>>, %arg4: memref<5x128x128xf32, #tpu.memory_space<vmem>>, %arg5: memref<1x128xf32, #tpu.memory_space<vmem>>, %arg6: memref<5x128x128xf32, #tpu.memory_space<vmem>>, %arg7: memref<1x128xf32, #tpu.memory_space<vmem>>, %arg8: memref<5x128x128xf32, #tpu.memory_space<vmem>>, %arg9: memref<1x128xf32, #tpu.memory_space<vmem>>, %arg10: memref<128x128xf32, #tpu.memory_space<vmem>>, %arg11: memref<1x128xf32, #tpu.memory_space<vmem>>, %arg12: memref<1x1x128xf32, #tpu.memory_space<vmem>>, %arg13: memref<30x128xf32, #tpu.memory_space<vmem>>, %arg14: memref<13x128xf32, #tpu.memory_space<vmem>>, %arg15: memref<5x128xf32, #tpu.memory_space<vmem>>) attributes {dimension_semantics = [#tpu.dimension_semantics<parallel>], iteration_bounds = array<i64: 2>, scalar_prefetch = 0 : i64, scratch_operands = 3 : i64, tpu.core_type = #tpu.core_type<tc>, window_params = [{transform_indices = @transform_0, window_bounds = array<i64: 1, 64, 8>}, {pipeline_mode = #tpu.pipeline_mode<synchronous>, transform_indices = @transform_1, window_bounds = array<i64: 5, 8, 128>}, {pipeline_mode = #tpu.pipeline_mode<synchronous>, transform_indices = @transform_2, window_bounds = array<i64: 1, 128>}, {pipeline_mode = #tpu.pipeline_mode<synchronous>, transform_indices = @transform_3, window_bounds = array<i64: 5, 128, 128>}, {pipeline_mode = #tpu.pipeline_mode<synchronous>, transform_indices = @transform_4, window_bounds = array<i64: 1, 128>}, {pipeline_mode = #tpu.pipeline_mode<synchronous>, transform_indices = @transform_5, window_bounds = array<i64: 5, 128, 128>}, {pipeline_mode = #tpu.pipeline_mode<synchronous>, transform_indices = @transform_6, window_bounds = array<i64: 1, 128>}, {pipeline_mode = #tpu.pipeline_mode<synchronous>, transform_indices = @transform_7, window_bounds = array<i64: 5, 128, 128>}, {pipeline_mode = #tpu.pipeline_mode<synchronous>, transform_indices = @transform_8, window_bounds = array<i64: 1, 128>}, {pipeline_mode = #tpu.pipeline_mode<synchronous>, transform_indices = @transform_9, window_bounds = array<i64: 128, 128>}, {pipeline_mode = #tpu.pipeline_mode<synchronous>, transform_indices = @transform_10, window_bounds = array<i64: 1, 128>}, {transform_indices = @transform_11, window_bounds = array<i64: 1, 1, 128>}]} {
    %cst = arith.constant 0.000000e+00 : f32
    %0 = vector.broadcast %cst : f32 to vector<30x128xf32>
    %c0 = arith.constant 0 : index
    %c0_0 = arith.constant 0 : index
    %c0_1 = arith.constant 0 : index
    %1 = tpu.strided_load %arg1[%c0, %c0_0, %c0_1] {strides = array<i32: 1, 2, 1>} : memref<1x64x8xf32, #tpu.memory_space<vmem>>, vector<1x30x8xf32>
    %2 = vector.shape_cast %1 : vector<1x30x8xf32> to vector<30x8xf32>
    %c0_2 = arith.constant 0 : index
    %c0_3 = arith.constant 0 : index
    %c0_4 = arith.constant 0 : index
    %3 = vector.load %arg2[%c0_2, %c0_3, %c0_4] : memref<5x8x128xf32, #tpu.memory_space<vmem>>, vector<1x8x128xf32>
    %4 = vector.shape_cast %3 : vector<1x8x128xf32> to vector<8x128xf32>
    %cst_5 = arith.constant dense<0.000000e+00> : vector<30x128xf32>
    %5 = tpu.matmul %2, %4, %cst_5 {dimension_numbers = #tpu.dot_dimension_numbers<[1], [0], [0], [1], [0, 0, 1, 1], [], []>} : vector<30x8xf32>, vector<8x128xf32>, vector<30x128xf32> -> vector<30x128xf32>
    %6 = arith.addf %0, %5 : vector<30x128xf32>
    %c0_6 = arith.constant 0 : index
    %c1 = arith.constant 1 : index
    %c0_7 = arith.constant 0 : index
    %7 = tpu.strided_load %arg1[%c0_6, %c1, %c0_7] {strides = array<i32: 1, 2, 1>} : memref<1x64x8xf32, #tpu.memory_space<vmem>>, vector<1x30x8xf32>
    %8 = vector.shape_cast %7 : vector<1x30x8xf32> to vector<30x8xf32>
    %c1_8 = arith.constant 1 : index
    %c0_9 = arith.constant 0 : index
    %c0_10 = arith.constant 0 : index
    %9 = vector.load %arg2[%c1_8, %c0_9, %c0_10] : memref<5x8x128xf32, #tpu.memory_space<vmem>>, vector<1x8x128xf32>
    %10 = vector.shape_cast %9 : vector<1x8x128xf32> to vector<8x128xf32>
    %cst_11 = arith.constant dense<0.000000e+00> : vector<30x128xf32>
    %11 = tpu.matmul %8, %10, %cst_11 {dimension_numbers = #tpu.dot_dimension_numbers<[1], [0], [0], [1], [0, 0, 1, 1], [], []>} : vector<30x8xf32>, vector<8x128xf32>, vector<30x128xf32> -> vector<30x128xf32>
    %12 = arith.addf %6, %11 : vector<30x128xf32>
    %c0_12 = arith.constant 0 : index
    %c2 = arith.constant 2 : index
    %c0_13 = arith.constant 0 : index
    %13 = tpu.strided_load %arg1[%c0_12, %c2, %c0_13] {strides = array<i32: 1, 2, 1>} : memref<1x64x8xf32, #tpu.memory_space<vmem>>, vector<1x30x8xf32>
    %14 = vector.shape_cast %13 : vector<1x30x8xf32> to vector<30x8xf32>
    %c2_14 = arith.constant 2 : index
    %c0_15 = arith.constant 0 : index
    %c0_16 = arith.constant 0 : index
    %15 = vector.load %arg2[%c2_14, %c0_15, %c0_16] : memref<5x8x128xf32, #tpu.memory_space<vmem>>, vector<1x8x128xf32>
    %16 = vector.shape_cast %15 : vector<1x8x128xf32> to vector<8x128xf32>
    %cst_17 = arith.constant dense<0.000000e+00> : vector<30x128xf32>
    %17 = tpu.matmul %14, %16, %cst_17 {dimension_numbers = #tpu.dot_dimension_numbers<[1], [0], [0], [1], [0, 0, 1, 1], [], []>} : vector<30x8xf32>, vector<8x128xf32>, vector<30x128xf32> -> vector<30x128xf32>
    %18 = arith.addf %12, %17 : vector<30x128xf32>
    %c0_18 = arith.constant 0 : index
    %c3 = arith.constant 3 : index
    %c0_19 = arith.constant 0 : index
    %19 = tpu.strided_load %arg1[%c0_18, %c3, %c0_19] {strides = array<i32: 1, 2, 1>} : memref<1x64x8xf32, #tpu.memory_space<vmem>>, vector<1x30x8xf32>
    %20 = vector.shape_cast %19 : vector<1x30x8xf32> to vector<30x8xf32>
    %c3_20 = arith.constant 3 : index
    %c0_21 = arith.constant 0 : index
    %c0_22 = arith.constant 0 : index
    %21 = vector.load %arg2[%c3_20, %c0_21, %c0_22] : memref<5x8x128xf32, #tpu.memory_space<vmem>>, vector<1x8x128xf32>
    %22 = vector.shape_cast %21 : vector<1x8x128xf32> to vector<8x128xf32>
    %cst_23 = arith.constant dense<0.000000e+00> : vector<30x128xf32>
    %23 = tpu.matmul %20, %22, %cst_23 {dimension_numbers = #tpu.dot_dimension_numbers<[1], [0], [0], [1], [0, 0, 1, 1], [], []>} : vector<30x8xf32>, vector<8x128xf32>, vector<30x128xf32> -> vector<30x128xf32>
    %24 = arith.addf %18, %23 : vector<30x128xf32>
    %c0_24 = arith.constant 0 : index
    %c4 = arith.constant 4 : index
    %c0_25 = arith.constant 0 : index
    %25 = tpu.strided_load %arg1[%c0_24, %c4, %c0_25] {strides = array<i32: 1, 2, 1>} : memref<1x64x8xf32, #tpu.memory_space<vmem>>, vector<1x30x8xf32>
    %26 = vector.shape_cast %25 : vector<1x30x8xf32> to vector<30x8xf32>
    %c4_26 = arith.constant 4 : index
    %c0_27 = arith.constant 0 : index
    %c0_28 = arith.constant 0 : index
    %27 = vector.load %arg2[%c4_26, %c0_27, %c0_28] : memref<5x8x128xf32, #tpu.memory_space<vmem>>, vector<1x8x128xf32>
    %28 = vector.shape_cast %27 : vector<1x8x128xf32> to vector<8x128xf32>
    %cst_29 = arith.constant dense<0.000000e+00> : vector<30x128xf32>
    %29 = tpu.matmul %26, %28, %cst_29 {dimension_numbers = #tpu.dot_dimension_numbers<[1], [0], [0], [1], [0, 0, 1, 1], [], []>} : vector<30x8xf32>, vector<8x128xf32>, vector<30x128xf32> -> vector<30x128xf32>
    %30 = arith.addf %24, %29 : vector<30x128xf32>
    %c0_30 = arith.constant 0 : index
    %c0_31 = arith.constant 0 : index
    %31 = vector.load %arg3[%c0_30, %c0_31] : memref<1x128xf32, #tpu.memory_space<vmem>>, vector<1x128xf32>
    %32 = vector.broadcast %31 : vector<1x128xf32> to vector<30x128xf32>
    %33 = arith.addf %30, %32 : vector<30x128xf32>
    %cst_32 = arith.constant 0.000000e+00 : f32
    %34 = vector.broadcast %cst_32 : f32 to vector<30x128xf32>
    %35 = arith.maximumf %33, %34 : vector<30x128xf32>
    %c0_33 = arith.constant 0 : index
    %c0_34 = arith.constant 0 : index
    %36 = vector.load %arg13[%c0_33, %c0_34] : memref<30x128xf32, #tpu.memory_space<vmem>>, vector<30x128xf32>
    tpu.vector_store %arg13[%c0_33, %c0_34], %35 {strides = array<i32>} : memref<30x128xf32, #tpu.memory_space<vmem>>, vector<30x128xf32>,
    %cst_35 = arith.constant 0.000000e+00 : f32
    %37 = vector.broadcast %cst_35 : f32 to vector<13x128xf32>
    %c0_36 = arith.constant 0 : index
    %c0_37 = arith.constant 0 : index
    %38 = tpu.strided_load %arg13[%c0_36, %c0_37] {strides = array<i32: 2, 1>} : memref<30x128xf32, #tpu.memory_space<vmem>>, vector<13x128xf32>
    %c0_38 = arith.constant 0 : index
    %c0_39 = arith.constant 0 : index
    %c0_40 = arith.constant 0 : index
    %39 = vector.load %arg4[%c0_38, %c0_39, %c0_40] : memref<5x128x128xf32, #tpu.memory_space<vmem>>, vector<1x128x128xf32>
    %40 = vector.shape_cast %39 : vector<1x128x128xf32> to vector<128x128xf32>
    %cst_41 = arith.constant dense<0.000000e+00> : vector<13x128xf32>
    %41 = tpu.matmul %38, %40, %cst_41 {dimension_numbers = #tpu.dot_dimension_numbers<[1], [0], [0], [1], [0, 0, 1, 1], [], []>} : vector<13x128xf32>, vector<128x128xf32>, vector<13x128xf32> -> vector<13x128xf32>
    %42 = arith.addf %37, %41 : vector<13x128xf32>
    %c1_42 = arith.constant 1 : index
    %c0_43 = arith.constant 0 : index
    %43 = tpu.strided_load %arg13[%c1_42, %c0_43] {strides = array<i32: 2, 1>} : memref<30x128xf32, #tpu.memory_space<vmem>>, vector<13x128xf32>
    %c1_44 = arith.constant 1 : index
    %c0_45 = arith.constant 0 : index
    %c0_46 = arith.constant 0 : index
    %44 = vector.load %arg4[%c1_44, %c0_45, %c0_46] : memref<5x128x128xf32, #tpu.memory_space<vmem>>, vector<1x128x128xf32>
    %45 = vector.shape_cast %44 : vector<1x128x128xf32> to vector<128x128xf32>
    %cst_47 = arith.constant dense<0.000000e+00> : vector<13x128xf32>
    %46 = tpu.matmul %43, %45, %cst_47 {dimension_numbers = #tpu.dot_dimension_numbers<[1], [0], [0], [1], [0, 0, 1, 1], [], []>} : vector<13x128xf32>, vector<128x128xf32>, vector<13x128xf32> -> vector<13x128xf32>
    %47 = arith.addf %42, %46 : vector<13x128xf32>
    %c2_48 = arith.constant 2 : index
    %c0_49 = arith.constant 0 : index
    %48 = tpu.strided_load %arg13[%c2_48, %c0_49] {strides = array<i32: 2, 1>} : memref<30x128xf32, #tpu.memory_space<vmem>>, vector<13x128xf32>
    %c2_50 = arith.constant 2 : index
    %c0_51 = arith.constant 0 : index
    %c0_52 = arith.constant 0 : index
    %49 = vector.load %arg4[%c2_50, %c0_51, %c0_52] : memref<5x128x128xf32, #tpu.memory_space<vmem>>, vector<1x128x128xf32>
    %50 = vector.shape_cast %49 : vector<1x128x128xf32> to vector<128x128xf32>
    %cst_53 = arith.constant dense<0.000000e+00> : vector<13x128xf32>
    %51 = tpu.matmul %48, %50, %cst_53 {dimension_numbers = #tpu.dot_dimension_numbers<[1], [0], [0], [1], [0, 0, 1, 1], [], []>} : vector<13x128xf32>, vector<128x128xf32>, vector<13x128xf32> -> vector<13x128xf32>
    %52 = arith.addf %47, %51 : vector<13x128xf32>
    %c3_54 = arith.constant 3 : index
    %c0_55 = arith.constant 0 : index
    %53 = tpu.strided_load %arg13[%c3_54, %c0_55] {strides = array<i32: 2, 1>} : memref<30x128xf32, #tpu.memory_space<vmem>>, vector<13x128xf32>
    %c3_56 = arith.constant 3 : index
    %c0_57 = arith.constant 0 : index
    %c0_58 = arith.constant 0 : index
    %54 = vector.load %arg4[%c3_56, %c0_57, %c0_58] : memref<5x128x128xf32, #tpu.memory_space<vmem>>, vector<1x128x128xf32>
    %55 = vector.shape_cast %54 : vector<1x128x128xf32> to vector<128x128xf32>
    %cst_59 = arith.constant dense<0.000000e+00> : vector<13x128xf32>
    %56 = tpu.matmul %53, %55, %cst_59 {dimension_numbers = #tpu.dot_dimension_numbers<[1], [0], [0], [1], [0, 0, 1, 1], [], []>} : vector<13x128xf32>, vector<128x128xf32>, vector<13x128xf32> -> vector<13x128xf32>
    %57 = arith.addf %52, %56 : vector<13x128xf32>
    %c4_60 = arith.constant 4 : index
    %c0_61 = arith.constant 0 : index
    %58 = tpu.strided_load %arg13[%c4_60, %c0_61] {strides = array<i32: 2, 1>} : memref<30x128xf32, #tpu.memory_space<vmem>>, vector<13x128xf32>
    %c4_62 = arith.constant 4 : index
    %c0_63 = arith.constant 0 : index
    %c0_64 = arith.constant 0 : index
    %59 = vector.load %arg4[%c4_62, %c0_63, %c0_64] : memref<5x128x128xf32, #tpu.memory_space<vmem>>, vector<1x128x128xf32>
    %60 = vector.shape_cast %59 : vector<1x128x128xf32> to vector<128x128xf32>
    %cst_65 = arith.constant dense<0.000000e+00> : vector<13x128xf32>
    %61 = tpu.matmul %58, %60, %cst_65 {dimension_numbers = #tpu.dot_dimension_numbers<[1], [0], [0], [1], [0, 0, 1, 1], [], []>} : vector<13x128xf32>, vector<128x128xf32>, vector<13x128xf32> -> vector<13x128xf32>
    %62 = arith.addf %57, %61 : vector<13x128xf32>
    %c0_66 = arith.constant 0 : index
    %c0_67 = arith.constant 0 : index
    %63 = vector.load %arg5[%c0_66, %c0_67] : memref<1x128xf32, #tpu.memory_space<vmem>>, vector<1x128xf32>
    %64 = vector.broadcast %63 : vector<1x128xf32> to vector<13x128xf32>
    %65 = arith.addf %62, %64 : vector<13x128xf32>
    %cst_68 = arith.constant 0.000000e+00 : f32
    %66 = vector.broadcast %cst_68 : f32 to vector<13x128xf32>
    %67 = arith.maximumf %65, %66 : vector<13x128xf32>
    %c0_69 = arith.constant 0 : index
    %c0_70 = arith.constant 0 : index
    %68 = vector.load %arg14[%c0_69, %c0_70] : memref<13x128xf32, #tpu.memory_space<vmem>>, vector<13x128xf32>
    tpu.vector_store %arg14[%c0_69, %c0_70], %67 {strides = array<i32>} : memref<13x128xf32, #tpu.memory_space<vmem>>, vector<13x128xf32>,
    %cst_71 = arith.constant 0.000000e+00 : f32
    %69 = vector.broadcast %cst_71 : f32 to vector<5x128xf32>
    %c0_72 = arith.constant 0 : index
    %c0_73 = arith.constant 0 : index
    %70 = tpu.strided_load %arg14[%c0_72, %c0_73] {strides = array<i32: 2, 1>} : memref<13x128xf32, #tpu.memory_space<vmem>>, vector<5x128xf32>
    %c0_74 = arith.constant 0 : index
    %c0_75 = arith.constant 0 : index
    %c0_76 = arith.constant 0 : index
    %71 = vector.load %arg6[%c0_74, %c0_75, %c0_76] : memref<5x128x128xf32, #tpu.memory_space<vmem>>, vector<1x128x128xf32>
    %72 = vector.shape_cast %71 : vector<1x128x128xf32> to vector<128x128xf32>
    %cst_77 = arith.constant dense<0.000000e+00> : vector<5x128xf32>
    %73 = tpu.matmul %70, %72, %cst_77 {dimension_numbers = #tpu.dot_dimension_numbers<[1], [0], [0], [1], [0, 0, 1, 1], [], []>} : vector<5x128xf32>, vector<128x128xf32>, vector<5x128xf32> -> vector<5x128xf32>
    %74 = arith.addf %69, %73 : vector<5x128xf32>
    %c1_78 = arith.constant 1 : index
    %c0_79 = arith.constant 0 : index
    %75 = tpu.strided_load %arg14[%c1_78, %c0_79] {strides = array<i32: 2, 1>} : memref<13x128xf32, #tpu.memory_space<vmem>>, vector<5x128xf32>
    %c1_80 = arith.constant 1 : index
    %c0_81 = arith.constant 0 : index
    %c0_82 = arith.constant 0 : index
    %76 = vector.load %arg6[%c1_80, %c0_81, %c0_82] : memref<5x128x128xf32, #tpu.memory_space<vmem>>, vector<1x128x128xf32>
    %77 = vector.shape_cast %76 : vector<1x128x128xf32> to vector<128x128xf32>
    %cst_83 = arith.constant dense<0.000000e+00> : vector<5x128xf32>
    %78 = tpu.matmul %75, %77, %cst_83 {dimension_numbers = #tpu.dot_dimension_numbers<[1], [0], [0], [1], [0, 0, 1, 1], [], []>} : vector<5x128xf32>, vector<128x128xf32>, vector<5x128xf32> -> vector<5x128xf32>
    %79 = arith.addf %74, %78 : vector<5x128xf32>
    %c2_84 = arith.constant 2 : index
    %c0_85 = arith.constant 0 : index
    %80 = tpu.strided_load %arg14[%c2_84, %c0_85] {strides = array<i32: 2, 1>} : memref<13x128xf32, #tpu.memory_space<vmem>>, vector<5x128xf32>
    %c2_86 = arith.constant 2 : index
    %c0_87 = arith.constant 0 : index
    %c0_88 = arith.constant 0 : index
    %81 = vector.load %arg6[%c2_86, %c0_87, %c0_88] : memref<5x128x128xf32, #tpu.memory_space<vmem>>, vector<1x128x128xf32>
    %82 = vector.shape_cast %81 : vector<1x128x128xf32> to vector<128x128xf32>
    %cst_89 = arith.constant dense<0.000000e+00> : vector<5x128xf32>
    %83 = tpu.matmul %80, %82, %cst_89 {dimension_numbers = #tpu.dot_dimension_numbers<[1], [0], [0], [1], [0, 0, 1, 1], [], []>} : vector<5x128xf32>, vector<128x128xf32>, vector<5x128xf32> -> vector<5x128xf32>
    %84 = arith.addf %79, %83 : vector<5x128xf32>
    %c3_90 = arith.constant 3 : index
    %c0_91 = arith.constant 0 : index
    %85 = tpu.strided_load %arg14[%c3_90, %c0_91] {strides = array<i32: 2, 1>} : memref<13x128xf32, #tpu.memory_space<vmem>>, vector<5x128xf32>
    %c3_92 = arith.constant 3 : index
    %c0_93 = arith.constant 0 : index
    %c0_94 = arith.constant 0 : index
    %86 = vector.load %arg6[%c3_92, %c0_93, %c0_94] : memref<5x128x128xf32, #tpu.memory_space<vmem>>, vector<1x128x128xf32>
    %87 = vector.shape_cast %86 : vector<1x128x128xf32> to vector<128x128xf32>
    %cst_95 = arith.constant dense<0.000000e+00> : vector<5x128xf32>
    %88 = tpu.matmul %85, %87, %cst_95 {dimension_numbers = #tpu.dot_dimension_numbers<[1], [0], [0], [1], [0, 0, 1, 1], [], []>} : vector<5x128xf32>, vector<128x128xf32>, vector<5x128xf32> -> vector<5x128xf32>
    %89 = arith.addf %84, %88 : vector<5x128xf32>
    %c4_96 = arith.constant 4 : index
    %c0_97 = arith.constant 0 : index
    %90 = tpu.strided_load %arg14[%c4_96, %c0_97] {strides = array<i32: 2, 1>} : memref<13x128xf32, #tpu.memory_space<vmem>>, vector<5x128xf32>
    %c4_98 = arith.constant 4 : index
    %c0_99 = arith.constant 0 : index
    %c0_100 = arith.constant 0 : index
    %91 = vector.load %arg6[%c4_98, %c0_99, %c0_100] : memref<5x128x128xf32, #tpu.memory_space<vmem>>, vector<1x128x128xf32>
    %92 = vector.shape_cast %91 : vector<1x128x128xf32> to vector<128x128xf32>
    %cst_101 = arith.constant dense<0.000000e+00> : vector<5x128xf32>
    %93 = tpu.matmul %90, %92, %cst_101 {dimension_numbers = #tpu.dot_dimension_numbers<[1], [0], [0], [1], [0, 0, 1, 1], [], []>} : vector<5x128xf32>, vector<128x128xf32>, vector<5x128xf32> -> vector<5x128xf32>
    %94 = arith.addf %89, %93 : vector<5x128xf32>
    %c0_102 = arith.constant 0 : index
    %c0_103 = arith.constant 0 : index
    %95 = vector.load %arg7[%c0_102, %c0_103] : memref<1x128xf32, #tpu.memory_space<vmem>>, vector<1x128xf32>
    %96 = vector.broadcast %95 : vector<1x128xf32> to vector<5x128xf32>
    %97 = arith.addf %94, %96 : vector<5x128xf32>
    %cst_104 = arith.constant 0.000000e+00 : f32
    %98 = vector.broadcast %cst_104 : f32 to vector<5x128xf32>
    %99 = arith.maximumf %97, %98 : vector<5x128xf32>
    %c0_105 = arith.constant 0 : index
    %c0_106 = arith.constant 0 : index
    %100 = vector.load %arg15[%c0_105, %c0_106] : memref<5x128xf32, #tpu.memory_space<vmem>>, vector<5x128xf32>
    tpu.vector_store %arg15[%c0_105, %c0_106], %99 {strides = array<i32>} : memref<5x128xf32, #tpu.memory_space<vmem>>, vector<5x128xf32>,
    %c0_107 = arith.constant 0 : index
    %c0_108 = arith.constant 0 : index
    %101 = vector.load %arg15[%c0_107, %c0_108] : memref<5x128xf32, #tpu.memory_space<vmem>>, vector<5x128xf32>
    %c0_109 = arith.constant 0 : index
    %c0_110 = arith.constant 0 : index
    %102 = vector.load %arg9[%c0_109, %c0_110] : memref<1x128xf32, #tpu.memory_space<vmem>>, vector<1x128xf32>
    %103 = vector.extract_strided_slice %101 {offsets = [0, 0], sizes = [1, 128], strides = [1, 1]} : vector<5x128xf32> to vector<1x128xf32>
    %c0_111 = arith.constant 0 : index
    %c0_112 = arith.constant 0 : index
    %c0_113 = arith.constant 0 : index
    %104 = vector.load %arg8[%c0_111, %c0_112, %c0_113] : memref<5x128x128xf32, #tpu.memory_space<vmem>>, vector<1x128x128xf32>
    %105 = vector.shape_cast %104 : vector<1x128x128xf32> to vector<128x128xf32>
    %cst_114 = arith.constant dense<0.000000e+00> : vector<1x128xf32>
    %106 = tpu.matmul %103, %105, %cst_114 {dimension_numbers = #tpu.dot_dimension_numbers<[1], [0], [0], [1], [0, 0, 1, 1], [], []>} : vector<1x128xf32>, vector<128x128xf32>, vector<1x128xf32> -> vector<1x128xf32>
    %107 = arith.addf %102, %106 : vector<1x128xf32>
    %108 = vector.extract_strided_slice %101 {offsets = [1, 0], sizes = [1, 128], strides = [1, 1]} : vector<5x128xf32> to vector<1x128xf32>
    %c1_115 = arith.constant 1 : index
    %c0_116 = arith.constant 0 : index
    %c0_117 = arith.constant 0 : index
    %109 = vector.load %arg8[%c1_115, %c0_116, %c0_117] : memref<5x128x128xf32, #tpu.memory_space<vmem>>, vector<1x128x128xf32>
    %110 = vector.shape_cast %109 : vector<1x128x128xf32> to vector<128x128xf32>
    %cst_118 = arith.constant dense<0.000000e+00> : vector<1x128xf32>
    %111 = tpu.matmul %108, %110, %cst_118 {dimension_numbers = #tpu.dot_dimension_numbers<[1], [0], [0], [1], [0, 0, 1, 1], [], []>} : vector<1x128xf32>, vector<128x128xf32>, vector<1x128xf32> -> vector<1x128xf32>
    %112 = arith.addf %107, %111 : vector<1x128xf32>
    %113 = vector.extract_strided_slice %101 {offsets = [2, 0], sizes = [1, 128], strides = [1, 1]} : vector<5x128xf32> to vector<1x128xf32>
    %c2_119 = arith.constant 2 : index
    %c0_120 = arith.constant 0 : index
    %c0_121 = arith.constant 0 : index
    %114 = vector.load %arg8[%c2_119, %c0_120, %c0_121] : memref<5x128x128xf32, #tpu.memory_space<vmem>>, vector<1x128x128xf32>
    %115 = vector.shape_cast %114 : vector<1x128x128xf32> to vector<128x128xf32>
    %cst_122 = arith.constant dense<0.000000e+00> : vector<1x128xf32>
    %116 = tpu.matmul %113, %115, %cst_122 {dimension_numbers = #tpu.dot_dimension_numbers<[1], [0], [0], [1], [0, 0, 1, 1], [], []>} : vector<1x128xf32>, vector<128x128xf32>, vector<1x128xf32> -> vector<1x128xf32>
    %117 = arith.addf %112, %116 : vector<1x128xf32>
    %118 = vector.extract_strided_slice %101 {offsets = [3, 0], sizes = [1, 128], strides = [1, 1]} : vector<5x128xf32> to vector<1x128xf32>
    %c3_123 = arith.constant 3 : index
    %c0_124 = arith.constant 0 : index
    %c0_125 = arith.constant 0 : index
    %119 = vector.load %arg8[%c3_123, %c0_124, %c0_125] : memref<5x128x128xf32, #tpu.memory_space<vmem>>, vector<1x128x128xf32>
    %120 = vector.shape_cast %119 : vector<1x128x128xf32> to vector<128x128xf32>
    %cst_126 = arith.constant dense<0.000000e+00> : vector<1x128xf32>
    %121 = tpu.matmul %118, %120, %cst_126 {dimension_numbers = #tpu.dot_dimension_numbers<[1], [0], [0], [1], [0, 0, 1, 1], [], []>} : vector<1x128xf32>, vector<128x128xf32>, vector<1x128xf32> -> vector<1x128xf32>
    %122 = arith.addf %117, %121 : vector<1x128xf32>
    %123 = vector.extract_strided_slice %101 {offsets = [4, 0], sizes = [1, 128], strides = [1, 1]} : vector<5x128xf32> to vector<1x128xf32>
    %c4_127 = arith.constant 4 : index
    %c0_128 = arith.constant 0 : index
    %c0_129 = arith.constant 0 : index
    %124 = vector.load %arg8[%c4_127, %c0_128, %c0_129] : memref<5x128x128xf32, #tpu.memory_space<vmem>>, vector<1x128x128xf32>
    %125 = vector.shape_cast %124 : vector<1x128x128xf32> to vector<128x128xf32>
    %cst_130 = arith.constant dense<0.000000e+00> : vector<1x128xf32>
    %126 = tpu.matmul %123, %125, %cst_130 {dimension_numbers = #tpu.dot_dimension_numbers<[1], [0], [0], [1], [0, 0, 1, 1], [], []>} : vector<1x128xf32>, vector<128x128xf32>, vector<1x128xf32> -> vector<1x128xf32>
    %127 = arith.addf %122, %126 : vector<1x128xf32>
    %c0_131 = arith.constant 0 : index
    %c0_132 = arith.constant 0 : index
    %128 = vector.load %arg10[%c0_131, %c0_132] : memref<128x128xf32, #tpu.memory_space<vmem>>, vector<128x128xf32>
    %cst_133 = arith.constant dense<0.000000e+00> : vector<1x128xf32>
    %129 = tpu.matmul %127, %128, %cst_133 {dimension_numbers = #tpu.dot_dimension_numbers<[1], [0], [0], [1], [0, 0, 1, 1], [], []>} : vector<1x128xf32>, vector<128x128xf32>, vector<1x128xf32> -> vector<1x128xf32>
    %c0_134 = arith.constant 0 : index
    %c0_135 = arith.constant 0 : index
    %130 = vector.load %arg11[%c0_134, %c0_135] : memref<1x128xf32, #tpu.memory_space<vmem>>, vector<1x128xf32>
    %131 = arith.addf %129, %130 : vector<1x128xf32>
    %c0_136 = arith.constant 0 : index
    %c0_137 = arith.constant 0 : index
    %c0_138 = arith.constant 0 : index
    %132 = vector.load %arg12[%c0_136, %c0_137, %c0_138] : memref<1x1x128xf32, #tpu.memory_space<vmem>>, vector<1x1x128xf32>
    %133 = vector.shape_cast %132 : vector<1x1x128xf32> to vector<1x128xf32>
    %134 = vector.shape_cast %131 : vector<1x128xf32> to vector<1x1x128xf32>
    tpu.vector_store %arg12[%c0_136, %c0_137, %c0_138], %134 {strides = array<i32>} : memref<1x1x128xf32, #tpu.memory_space<vmem>>, vector<1x1x128xf32>,
    return
  }
  func.func @transform_0(%arg0: i32) -> (i32, i32, i32) {
    %c0_i32 = arith.constant 0 : i32
    %c0_i32_0 = arith.constant 0 : i32
    %c0_i32_1 = arith.constant 0 : i32
    return %arg0, %c0_i32, %c0_i32_0 : i32, i32, i32
  }
  func.func @transform_1(%arg0: i32) -> (i32, i32, i32) {
    %c0_i32 = arith.constant 0 : i32
    %c0_i32_0 = arith.constant 0 : i32
    %c0_i32_1 = arith.constant 0 : i32
    %c0_i32_2 = arith.constant 0 : i32
    return %c0_i32, %c0_i32_0, %c0_i32_1 : i32, i32, i32
  }
  func.func @transform_2(%arg0: i32) -> (i32, i32) {
    %c0_i32 = arith.constant 0 : i32
    %c0_i32_0 = arith.constant 0 : i32
    %c0_i32_1 = arith.constant 0 : i32
    return %c0_i32, %c0_i32_0 : i32, i32
  }
  func.func @transform_3(%arg0: i32) -> (i32, i32, i32) {
    %c0_i32 = arith.constant 0 : i32
    %c0_i32_0 = arith.constant 0 : i32
    %c0_i32_1 = arith.constant 0 : i32
    %c0_i32_2 = arith.constant 0 : i32
    return %c0_i32, %c0_i32_0, %c0_i32_1 : i32, i32, i32
  }
  func.func @transform_4(%arg0: i32) -> (i32, i32) {
    %c0_i32 = arith.constant 0 : i32
    %c0_i32_0 = arith.constant 0 : i32
    %c0_i32_1 = arith.constant 0 : i32
    return %c0_i32, %c0_i32_0 : i32, i32
  }
  func.func @transform_5(%arg0: i32) -> (i32, i32, i32) {
    %c0_i32 = arith.constant 0 : i32
    %c0_i32_0 = arith.constant 0 : i32
    %c0_i32_1 = arith.constant 0 : i32
    %c0_i32_2 = arith.constant 0 : i32
    return %c0_i32, %c0_i32_0, %c0_i32_1 : i32, i32, i32
  }
  func.func @transform_6(%arg0: i32) -> (i32, i32) {
    %c0_i32 = arith.constant 0 : i32
    %c0_i32_0 = arith.constant 0 : i32
    %c0_i32_1 = arith.constant 0 : i32
    return %c0_i32, %c0_i32_0 : i32, i32
  }
  func.func @transform_7(%arg0: i32) -> (i32, i32, i32) {
    %c0_i32 = arith.constant 0 : i32
    %c0_i32_0 = arith.constant 0 : i32
    %c0_i32_1 = arith.constant 0 : i32
    %c0_i32_2 = arith.constant 0 : i32
    return %c0_i32, %c0_i32_0, %c0_i32_1 : i32, i32, i32
  }
  func.func @transform_8(%arg0: i32) -> (i32, i32) {
    %c0_i32 = arith.constant 0 : i32
    %c0_i32_0 = arith.constant 0 : i32
    %c0_i32_1 = arith.constant 0 : i32
    return %c0_i32, %c0_i32_0 : i32, i32
  }
  func.func @transform_9(%arg0: i32) -> (i32, i32) {
    %c0_i32 = arith.constant 0 : i32
    %c0_i32_0 = arith.constant 0 : i32
    %c0_i32_1 = arith.constant 0 : i32
    return %c0_i32, %c0_i32_0 : i32, i32
  }
  func.func @transform_10(%arg0: i32) -> (i32, i32) {
    %c0_i32 = arith.constant 0 : i32
    %c0_i32_0 = arith.constant 0 : i32
    %c0_i32_1 = arith.constant 0 : i32
    return %c0_i32, %c0_i32_0 : i32, i32
  }
  func.func @transform_11(%arg0: i32) -> (i32, i32, i32) {
    %c0_i32 = arith.constant 0 : i32
    %c0_i32_0 = arith.constant 0 : i32
    %c0_i32_1 = arith.constant 0 : i32
    return %arg0, %c0_i32, %c0_i32_0 : i32, i32, i32
  }
}

</mosaic_0001>

<bundles_post_ra>
// kernel: forward.1
= control target key start
LH: loop header
LB: loop body
LE: loop exit
PB: predicated region body
PF: predicated region fallthrough
CT: control target
= control target key end

     0   :  { %s4750_s0 = inlined_call_operand.vmem [shape: f32[2,64,8], index: 0, kind: input, shape index: {}]   ;;  %s4751_s1 = inlined_call_operand.vmem [shape: f32[5,8,128], index: 1, kind: input, shape index: {}]   ;;  %s4752_s2 = inlined_call_operand.vmem [shape: f32[1,128], index: 2, kind: input, shape index: {}]   ;;  %s4753_s3 = inlined_call_operand.hbm [shape: f32[5,128,128], index: 3, kind: input, shape index: {}]   ;;  %s4754_s4 = inlined_call_operand.vmem [shape: f32[1,128], index: 4, kind: input, shape index: {}]   ;;  %s4755_s5 = inlined_call_operand.hbm [shape: f32[5,128,128], index: 5, kind: input, shape index: {}]   ;;  %s4756_s6 = inlined_call_operand.vmem [shape: f32[1,128], index: 6, kind: input, shape index: {}]   ;;  %s4757_s7 = inlined_call_operand.hbm [shape: f32[5,128,128], index: 7, kind: input, shape index: {}]   ;;  %s4758_s8 = inlined_call_operand.vmem [shape: f32[1,128], index: 8, kind: input, shape index: {}]   ;;  %s4759_s9 = inlined_call_operand.vmem [shape: f32[128,128], index: 9, kind: input, shape index: {}]   ;;  %s4760_s10 = inlined_call_operand.vmem [shape: f32[1,128], index: 10, kind: input, shape index: {}]   ;;  %s4761_s11 = inlined_call_operand.hbm [shape: f32[2,1,128], index: 11, kind: output, shape index: {}]  }
   0x1   :  { %4772 = sst [smem:[#allocation21_spill]] %s4761_s11 }
   0x2   :  { %16 = vsyncpa [#allocation6], 0 }
   0x3   :  { %17 = vsyncpa [#allocation9], 0 }
   0x4   :  { %18 = vsyncpa [#allocation7], 0 }
   0x5   :  { %20 = vsyncpa [#allocation7 + $0x1], 0  ;;  %s4304_s17 = smov 0   ;;  %s4306_s18 = smov 0  }
   0x6   :  { %s4308_s19 = smov 0   ;;  %s4310_s20 = smov 0  }
   0x7 LB: > { %4773 = sst [smem:[#allocation15_spill]] %s4221_s17  ;;  %s4325_s21 = sadd.s32 4294967295, %s4233_s20   ;;  %s4233_s20 = sphi %s4310_s20, %s4795_s20   ;;  %s4229_s19 = sphi %s4308_s19, %s4797_s19   ;;  %s4225_s18 = sphi %s4306_s18, %s4799_s18   ;;  %s4221_s17 = sphi %s4304_s17, %s4798_s17  }
   0x8   : > { %4774 = sst [smem:[#allocation16_spill]] %s4229_s19  ;;  %s2583_s22 = sadd.s32 4294967294, %s4233_s20  }
   0x9   : > { %4775 = sst [smem:[#allocation17_spill]] %s4233_s20  ;;  %s4329_s23 = sadd.s32 1, %s4233_s20  }
   0xa   : > { %4776 = sst [smem:[#allocation18_spill]] %s4329_s23  ;;  %s269_s24 = sadd.s32 1, %s4229_s19 }
   0xb   : > { %s266_s25 = ssub.s32 %s4233_s20, %s4329_s23  ;;  %p279_p0 = scmp.ne.s32.totalorder %s4229_s19, %s4225_s18 }
   0xc   : > { %p267_p1 = scmp.eq.s32.totalorder %s266_s25, 0  ;;  %p280_p2 = scmp.eq.s32.totalorder %s4325_s21, 1 }
   0xd   : > { %p285_p3 = scmp.ne.s32.totalorder %s4225_s18, %s4221_s17  ;;  %p286_p4 = scmp.eq.s32.totalorder %s2583_s22, 1 }
   0xe   : > { %s4340_s26 = scalar_select %p267_p1, %s4229_s19, %s269_s24  }
   0xf   : > { %p4342_p5 = por %p280_p2, %p279_p0  ;;  %p4346_p6 = por %p286_p4, %p285_p3 }
  0x10   : > { %4777 = sst [smem:[#allocation19_spill]] %s4340_s26  ;;  %p2584_p7 = scmp.ge.s32.totalorder %s4233_s20, 1 }
  0x11   : > { %s4778_s27 = scalar_select %p4342_p5, 1, 0 }
  0x12   : > { %s4779_s28 = scalar_select %p4346_p6, 1, 0 }
  0x13   : > { %p293_p8 = scmp.lt.s32.totalorder %s4233_s20, 3  ;;  %p4765_p9 = scmp.eq.s32.totalorder %s4325_s21, 0 }
  0x14   : > { %4780 = sst [smem:[#allocation20_spill]] %s4779_s28  ;;  %s4235_s30 = smov [#allocation8]  }
  0x15   : > { %p4353_p10 = pnand %p2584_p7, %p293_p8  ;;  %s327_s12 = sshll.u32 %s4235_s30, 4  ;;  %s4359_s12 = int_to_ptr.vmem [resolvable:$true] %s327_s12 }
  0x16   : > { %s4236_s14 = smov [#allocation5]   ;;  %s4237_s16 = smov [#allocation10]  }
  0x17   : > { %s4781_s29 = scalar_select %p4353_p10, 1, 0 }
  0x18   : > { %p4018_p11 = pneg %p4353_p10  ;;  %s311_s15 = sshll.u32 %s4236_s14, 4  ;;  %s4367_s15 = int_to_ptr.vmem [resolvable:$true] %s311_s15 }
  0x19   : > { %s4369_s22 = sshll.u32 %s4237_s16, 4  ;;  %s4079_s26 = scalar_lea.hbm %s4755_s5, 10240  ;;  %s344_s22 = int_to_ptr.vmem [resolvable:$true] %s4369_s22 }
  0x1a   : > { %p4363_p12 = pnand %p4765_p9, %p4018_p11  ;;  %p4080_p13 = scmp.ne.s32.totalorder %s4755_s5, %s4079_s26 }
  0x1b   : > { %p4086_p3 = scmp.lt.u32.totalorder %s4079_s26, %s4755_s5 }
  0x1c   : > { %p4379_p0 = pneg %p4363_p12 }
  0x1e   : > { %p4082_p1 = pnand %p4379_p0, %p4080_p13 }
  0x20   : > { %p4083_p2 = pneg %p4082_p1 }
  0x22   : > { %p4088_p4 = pnand %p4086_p3, %p4083_p2 }
  0x24   : > { %4091 = shalt.err (!%p4088_p4)
}
  0x25   : > { %s4092_s19 = scalar_lea.vmem %s4359_s12, 10240  ;;  %p4100_p9 = scmp.lt.s32.totalorder %s4359_s12, %s4359_s12 }
  0x26   : > { %p4093_p7 = scmp.ne.s32.totalorder %s4359_s12, %s4092_s19  ;;  %p4101_p6 = scmp.lt.s32.totalorder %s4092_s19, %s4092_s19 }
  0x28   : > { %p4095_p8 = pnand %p4093_p7, %p4379_p0  ;;  %p4102_p13 = por %p4101_p6, %p4100_p9 }
  0x2a   : > { %p4096_p11 = pneg %p4095_p8 }
  0x2c   : > { %p4103_p1 = pnand %p4102_p13, %p4096_p11 }
  0x2e   : > { %4106 = shalt.err (!%p4103_p1)
}
  0x2f   : > { %s4238_s24 = smov 128   ;;  %s4239_s26 = smov 8  }
  0x30   : > { %4024 = dma.hbm_to_vmem [thread:$0]  (!%p4363_p12), %s4755_s5, 10240, %s4359_s12, [#allocation9], %s4238_s24, %s4238_s24, %s4239_s26  }
  0x31   : > { %s4107_s19 = scalar_lea.hbm %s4753_s3, 10240 }
  0x32   : > { %p4108_p6 = scmp.ne.s32.totalorder %s4753_s3, %s4107_s19  ;;  %p4114_p3 = scmp.lt.u32.totalorder %s4107_s19, %s4753_s3 }
  0x34   : > { %p4110_p9 = pnand %p4108_p6, %p4379_p0 }
  0x36   : > { %p4111_p2 = pneg %p4110_p9 }
  0x38   : > { %p4116_p4 = pnand %p4114_p3, %p4111_p2 }
  0x3a   : > { %4119 = shalt.err (!%p4116_p4)
}
  0x3b   : > { %s4120_s12 = scalar_lea.vmem %s4367_s15, 10240  ;;  %p4128_p13 = scmp.lt.s32.totalorder %s4367_s15, %s4367_s15 }
  0x3c   : > { %p4121_p7 = scmp.ne.s32.totalorder %s4367_s15, %s4120_s12  ;;  %p4129_p1 = scmp.lt.s32.totalorder %s4120_s12, %s4120_s12 }
  0x3e   : > { %p4123_p8 = pnand %p4121_p7, %p4379_p0  ;;  %p4130_p6 = por %p4129_p1, %p4128_p13 }
  0x40   : > { %p4124_p11 = pneg %p4123_p8 }
  0x42   : > { %p4131_p9 = pnand %p4130_p6, %p4124_p11 }
  0x44   : > { %4134 = shalt.err (!%p4131_p9)
}
  0x45   : > { %4021 = dma.hbm_to_vmem [thread:$0]  (!%p4363_p12), %s4753_s3, 10240, %s4367_s15, [#allocation6], %s4238_s24, %s4238_s24, %s4239_s26  }
  0x46   : > { %s4135_s25 = scalar_lea.hbm %s4757_s7, 10240 }
  0x47   : > { %p4136_p2 = scmp.ne.s32.totalorder %s4757_s7, %s4135_s25  ;;  %p4142_p7 = scmp.lt.u32.totalorder %s4135_s25, %s4757_s7 }
  0x49   : > { %p4138_p3 = pnand %p4136_p2, %p4379_p0 }
  0x4b   : > { %p4139_p4 = pneg %p4138_p3 }
  0x4d   : > { %p4144_p8 = pnand %p4142_p7, %p4139_p4 }
  0x4f   : > { %4147 = shalt.err (!%p4144_p8)
}
  0x50   : > { %s4148_s12 = scalar_lea.vmem %s344_s22, 10240  ;;  %p4156_p6 = scmp.lt.s32.totalorder %s344_s22, %s344_s22 }
  0x51   : > { %p4149_p11 = scmp.ne.s32.totalorder %s344_s22, %s4148_s12  ;;  %p4157_p9 = scmp.lt.s32.totalorder %s4148_s12, %s4148_s12 }
  0x53   : > { %p4151_p13 = pnand %p4149_p11, %p4379_p0  ;;  %p4158_p5 = por %p4157_p9, %p4156_p6 }
  0x55   : > { %p4152_p1 = pneg %p4151_p13 }
  0x57   : > { %p4159_p10 = pnand %p4158_p5, %p4152_p1 }
  0x59   : > { %4162 = shalt.err (!%p4159_p10)
}
  0x5a   : > { %4027 = dma.hbm_to_vmem [thread:$0]  (!%p4363_p12), %s4757_s7, 10240, %s344_s22, [#allocation9], %s4238_s24, %s4238_s24, %s4239_s26  }
  0x5b   : > { %p4784_p2 = scmp.ne.s32.totalorder %s4781_s29, 0 }
  0x5c   : > { %p4785_p0 = scmp.eq.s32.totalorder (!%p4784_p2), %s4325_s21, 0 }
  0x5d   : > { %376 = sbr.rel (%p4784_p2) target bundleno = 1574 (0x626), region = 64 }
  0x64   : > { %4208 = dma.done.wait (%p4785_p0), [#allocation6], 10240   ;;  %p4786_p3 = pmov %p4785_p0 }
  0x65   : > { %p4787_p5 = pmov %p4785_p0 }
  0x66   : > { %4210 = vsyncadd (%p4786_p3), [#allocation6], 4294957056 }
  0x67   : > { %4212 = dma.done.wait (%p4787_p5), [#allocation9], 20480   ;;  %p4788_p10 = pmov %p4785_p0 }
  0x68   : > { %p423_p4 = scmp.lt.s32.totalorder %s4325_s21, 1  ;;  %vm446_vm0 = vcmask 64512   ;;  %v2602_v0 = vld [vmem:[%s4751_s1 + $0x8] sm:$0xff]  ;;  %v2615_v1 = vld [vmem:[%s4751_s1 + $0x10] sm:$0xff]  ;;  %v2624_v6 = vld [vmem:[%s4751_s1 + $0x18] sm:$0xff]  ;;  %vm4241_vm1 = vmmov 0  }
  0x69   : > { %4214 = vsyncadd (%p4788_p10), [#allocation9], 4294946816  ;;  %2947 = vmatprep.subr.mxu1 %v2602_v0  ;;  %2963 = vmatprep.subr.mxu0 %v2615_v1  ;;  %v435_v10 = vld [vmem:[%s4751_s1] sm:$0xff]  ;;  %v1017_v15 = vld [vmem:[#allocation5 + $0x80] sm:$0xff]  ;;  %s2641_s20 = sshll.u32 %s4325_s21, 4  ;;  %s4789_s16 = sld [smem:[#allocation21_spill]] }
  0x6a   : > { %s424_s23 = scalar_select %p423_p4, %s4325_s21, 1  ;;  %2948 = vmatpush3.msra.mxu1 %v2602_v0  ;;  %2964 = vmatpush3.msra.mxu0 %v2615_v1  ;;  %v2633_v12 = vld [vmem:[%s4751_s1 + $0x20] sm:$0xff]  ;;  %v1019_v21 = vld [vmem:[#allocation5 + $0x90] sm:$0xff]  ;;  %v1020_v22 = vld [vmem:[#allocation5 + $0x98] sm:$0xff] }
  0x6b   : > { %2971 = vmatprep.subr.mxu0 %v2624_v6  ;;  %2955 = vmatprep.subr.mxu1 %v435_v10  ;;  %v1018_v18 = vld [vmem:[#allocation5 + $0x88] sm:$0xff]  ;;  %v3551_v26 = vpack.c.bf16 %v1020_v22, %v1019_v21  ;;  %v1021_v31 = vld [vmem:[#allocation5 + $0xa0] sm:$0xff]  ;;  %v1023_v34 = vld [vmem:[#allocation5 + $0xb0] sm:$0xff]  ;;  %p4790_p7 = scmp.ne.s32.totalorder %s4778_s27, 0  ;;  %s4243_s21 = smov [#allocation11]  }
  0x6c   : > { %s2644_s13 = sshll.u32 %s424_s23, 6  ;;  %v3547_v20 = vpack.c.bf16 %v1018_v18, %v1017_v15  ;;  %v1022_v32 = vld [vmem:[#allocation5 + $0xa8] sm:$0xff]  ;;  %v1024_v35 = vld [vmem:[#allocation5 + $0xb8] sm:$0xff]  ;;  %v1025_v37 = vld [vmem:[#allocation5 + $0xc0] sm:$0xff]  ;;  %s4167_s11 = sshll.u32 %s4243_s21, 4  ;;  %s4168_s11 = int_to_ptr.vmem [resolvable:$false] %s4167_s11 }
  0x6d   : > { %s4466_s24 = scalar_lea.vmem %s4750_s0, %s2644_s13  ;;  %v3555_v33 = vpack.c.bf16 %v1022_v32, %v1021_v31  ;;  %v3559_v36 = vpack.c.bf16 %v1024_v35, %v1023_v34  ;;  %v1026_v38 = vld [vmem:[#allocation5 + $0xc8] sm:$0xff]  ;;  %v1027_v40 = vld [vmem:[#allocation5 + $0xd0] sm:$0xff]  ;;  %v1028_v41 = vld [vmem:[#allocation5 + $0xd8] sm:$0xff]  ;;  %s4169_s23 = scalar_lea.vmem %s4168_s11, 32 }
  0x6e   : > { %v2598_v2 = vld [vmem:[%s4466_s24 + $0x1] ss:$2 sm:$0xff]  ;;  %v2611_v3 = vld [vmem:[%s4466_s24 + $0x2] ss:$2 sm:$0xff]  ;;  %v2599_v4 = vld [vmem:[%s4466_s24 + $0x11] ss:$2 sm:$0xff]  ;;  %v3563_v39 = vpack.c.bf16 %v1026_v38, %v1025_v37  ;;  %v3567_v42 = vpack.c.bf16 %v1028_v41, %v1027_v40 }
  0x6f   : > { %v2612_v5 = vld [vmem:[%s4466_s24 + $0x12] ss:$2 sm:$0xff]  ;;  %2949 = vmatprep.mubr.msk.f32.mxu1 %vm446_vm0, %v2598_v2  ;;  %v2600_v7 = vld [vmem:[%s4466_s24 + $0x21] ss:$2 sm:$0xff]  ;;  %2965 = vmatprep.mubr.msk.f32.mxu0 %vm446_vm0, %v2611_v3  ;;  %v2613_v8 = vld [vmem:[%s4466_s24 + $0x22] ss:$2 sm:$0xff]  ;;  %s4708_s19 = scalar_lea.hbm %s4789_s16, %s2641_s20 }
  0x70   : > { %2950 = vmatmul.mubr.msk.f32.vlgmr.msra.gmra.mrb[0].mxu1 %vm446_vm0, %v2599_v4  ;;  %2966 = vmatmul.mubr.msk.f32.vlgmr.msra.gmra.mrb[0].mxu0 %vm446_vm0, %v2612_v5  ;;  %v2601_v9 = vld [vmem:[%s4466_s24 + $0x31] ss:$2 sm:$0x3f]  ;;  %v2614_v11 = vld [vmem:[%s4466_s24 + $0x32] ss:$2 sm:$0x3f] }
  0x71   : > { %2952 = vmatprep.mubr.msk.f32.mxu1 %vm446_vm0, %v2600_v7  ;;  %2972 = vmatpush3.msra.mxu0 %v2624_v6  ;;  %v428_v13 = vld [vmem:[%s4466_s24] ss:$2 sm:$0xff]  ;;  %v2620_v14 = vld [vmem:[%s4466_s24 + $0x3] ss:$2 sm:$0xff]  ;;  %v2595_v16 = vld [vmem:[%s4466_s24 + $0x10] ss:$2 sm:$0xff] }
  0x72   : > { %2968 = vmatprep.mubr.msk.f32.mxu0 %vm446_vm0, %v2613_v8  ;;  %2979 = vmatprep.subr.mxu0 %v2633_v12  ;;  %v2621_v17 = vld [vmem:[%s4466_s24 + $0x13] ss:$2 sm:$0xff]  ;;  %v2596_v19 = vld [vmem:[%s4466_s24 + $0x20] ss:$2 sm:$0xff]  ;;  %v2622_v23 = vld [vmem:[%s4466_s24 + $0x23] ss:$2 sm:$0xff] }
  0x73   : > { %2956 = vmatpush3.msra.mxu1 %v435_v10  ;;  %v2597_v24 = vld [vmem:[%s4466_s24 + $0x30] ss:$2 sm:$0x3f]  ;;  %v2623_v25 = vld [vmem:[%s4466_s24 + $0x33] ss:$2 sm:$0x3f] }
  0x74   : > { %2953 = vmatmul.mubr.msk.f32.gmra.mrb[2].mxu1 %vm446_vm0, %v2601_v9  ;;  %2969 = vmatmul.mubr.msk.f32.gmra.mrb[2].mxu0 %vm446_vm0, %v2614_v11  ;;  %v2629_v27 = vld [vmem:[%s4466_s24 + $0x4] ss:$2 sm:$0xff]  ;;  %v2630_v28 = vld [vmem:[%s4466_s24 + $0x14] ss:$2 sm:$0xff] }
  0x75   : > { %2957 = vmatprep.mubr.msk.f32.mxu1 %vm446_vm0, %v428_v13  ;;  %2973 = vmatprep.mubr.msk.f32.mxu0 %vm446_vm0, %v2620_v14  ;;  %v2631_v29 = vld [vmem:[%s4466_s24 + $0x24] ss:$2 sm:$0xff]  ;;  %v2632_v30 = vld [vmem:[%s4466_s24 + $0x34] ss:$2 sm:$0x3f]  ;;  %s421_s24 = sand.u32 1, %s4225_s18  }
  0x76   : > { %3548 = vmatprep.subr.bf16.mxu1 %v3547_v20  ;;  %v1029_v43 = vld [vmem:[#allocation5 + $0xe0] sm:$0xff]  ;;  %v1030_v44 = vld [vmem:[#allocation5 + $0xe8] sm:$0xff]  ;;  %v1031_v46 = vld [vmem:[#allocation5 + $0xf0] sm:$0xff]  ;;  %s422_s28 = scalar_lea.vmem [#allocation11], %s421_s24  ;;  %s2485_s12 = scalar_lea.sflag [#allocation7], %s421_s24 }
  0x77   : > { %v3571_v45 = vpack.c.bf16 %v1030_v44, %v1029_v43  ;;  %v1032_v47 = vld [vmem:[#allocation5 + $0xf8] sm:$0xff]  ;;  %v996_v49 = vld [vmem:[#allocation5] sm:$0xff]  ;;  %v997_v50 = vld [vmem:[#allocation5 + $0x8] sm:$0xff]  ;;  %s2497_s25 = sshll.u32 %s422_s28, 4  ;;  %s4710_s25 = int_to_ptr.vmem [resolvable:$true] %s2497_s25 }
  0x78   : > { %2958 = vmatmul.mubr.msk.f32.vlgmr.msra.gmra.mrb[0].mxu1 %vm446_vm0, %v2595_v16  ;;  %2974 = vmatmul.mubr.msk.f32.vlgmr.msra.gmra.mrb[0].mxu0 %vm446_vm0, %v2621_v17  ;;  %v3575_v48 = vpack.c.bf16 %v1032_v47, %v1031_v46  ;;  %v3579_v51 = vpack.c.bf16 %v997_v50, %v996_v49  ;;  %v2638_v57 = vld [vmem:[%s4752_s2] ss:$0 sm:$0xff]  ;;  %v998_v10 = vld [vmem:[#allocation5 + $0x10] sm:$0xff]  ;;  %v999_v11 = vld [vmem:[#allocation5 + $0x18] sm:$0xff]  ;;  %s4163_s15 = scalar_lea.vmem %s4710_s25, 16  ;;  %p4170_p13 = scmp.lt.s32.totalorder %s4710_s25, %s4168_s11 }
  0x79   : > { %2980 = vmatpush3.msra.mxu0 %v2633_v12  ;;  %2960 = vmatprep.mubr.msk.f32.mxu1 %vm446_vm0, %v2596_v19  ;;  %v3583_v12 = vpack.c.bf16 %v999_v11, %v998_v10  ;;  %v1000_v14 = vld [vmem:[#allocation5 + $0x20] sm:$0xff]  ;;  %v1001_v15 = vld [vmem:[#allocation5 + $0x28] sm:$0xff]  ;;  %v1002_v18 = vld [vmem:[#allocation5 + $0x30] sm:$0xff]  ;;  %v4240_v19 = vmov 0.0|0.0   ;;  %p4164_p12 = scmp.ne.s32.totalorder %s4710_s25, %s4163_s15  ;;  %p4171_p1 = scmp.lt.s32.totalorder %s4169_s23, %s4163_s15 }
  0x7a   : > { %2976 = vmatprep.mubr.msk.f32.mxu0 %vm446_vm0, %v2622_v23  ;;  %3550 = vmatpush3.bf16.msra.mxu1 %v3547_v20  ;;  %v3587_v17 = vpack.c.bf16 %v1001_v15, %v1000_v14  ;;  %v1003_v20 = vld [vmem:[#allocation5 + $0x38] sm:$0xff]  ;;  %v1491_v21 = vld [vmem:[#allocation8] sm:$0xff]  ;;  %v1492_v22 = vld [vmem:[#allocation8 + $0x8] sm:$0xff] }
  0x7b   : > { %3552 = vmatprep.subr.bf16.mxu1 %v3551_v26  ;;  %3731 = vmatprep.subr.bf16.mxu0 %v4240_v19  ;;  %v3732_v23 = vpack.c.bf16 %v1492_v22, %v1491_v21  ;;  %v1496_v31 = vld [vmem:[#allocation8 + $0x28] sm:$0xff]  ;;  %v1006_v34 = vld [vmem:[#allocation5 + $0x50] sm:$0xff]  ;;  %v1007_v35 = vld [vmem:[#allocation5 + $0x58] sm:$0xff]  ;;  %p4165_p8 = pnand %p4164_p12, %p4790_p7  ;;  %p4172_p6 = por %p4171_p1, %p4170_p13 }
  0x7c   : > { %2961 = vmatmul.mubr.msk.f32.gmra.mrb[2].mxu1 %vm446_vm0, %v2597_v24  ;;  %2977 = vmatmul.mubr.msk.f32.gmra.mrb[2].mxu0 %vm446_vm0, %v2623_v25  ;;  %v1493_v24 = vld [vmem:[#allocation8 + $0x10] sm:$0xff]  ;;  %v1494_v25 = vld [vmem:[#allocation8 + $0x18] sm:$0xff]  ;;  %v3599_v38 = vpack.c.bf16 %v1007_v35, %v1006_v34  ;;  %v1008_v40 = vld [vmem:[#allocation5 + $0x60] sm:$0xff] }
  0x7d   : > { %2981 = vmatprep.mubr.msk.f32.mxu0 %vm446_vm0, %v2629_v27  ;;  %v3735_v27 = vpack.c.bf16 %v1494_v25, %v1493_v24  ;;  %v1498_v37 = vld [vmem:[#allocation8 + $0x38] sm:$0xff]  ;;  %v1009_v41 = vld [vmem:[#allocation5 + $0x68] sm:$0xff]  ;;  %v1010_v46 = vld [vmem:[#allocation5 + $0x70] sm:$0xff]  ;;  %p4166_p11 = pneg %p4165_p8 }
  0x7e   : > { %3554 = vmatpush3.bf16.msra.mxu1 %v3551_v26  ;;  %v3591_v26 = vpack.c.bf16 %v1003_v20, %v1002_v18  ;;  %v1500_v43 = vld [vmem:[#allocation8 + $0x48] sm:$0xff]  ;;  %v3603_v44 = vpack.c.bf16 %v1009_v41, %v1008_v40  ;;  %v1011_v47 = vld [vmem:[#allocation5 + $0x78] sm:$0xff]  ;;  %v1188_v49 = vld [vmem:[#allocation5 + $0x100] sm:$0xff] }
  0x7f   : > { %3556 = vmatprep.subr.bf16.mxu1 %v3555_v33  ;;  %v1189_v50 = vld [vmem:[#allocation5 + $0x108] sm:$0xff]  ;;  %v1286_v11 = vld [vmem:[#allocation5 + $0x180] sm:$0xff]  ;;  %v1288_v14 = vld [vmem:[#allocation5 + $0x190] sm:$0xff]  ;;  %p4173_p9 = pnand %p4172_p6, %p4166_p11 }
  0x80   : > { %2982 = vmatmul.mubr.msk.f32.vlgmr.msra.gmra.mrb[0].mxu0 %vm446_vm0, %v2630_v28  ;;  %v1004_v28 = vld [vmem:[#allocation5 + $0x40] sm:$0xff]  ;;  %v1289_v15 = vld [vmem:[#allocation5 + $0x198] sm:$0xff]  ;;  %v1291_v20 = vld [vmem:[#allocation5 + $0x1a8] sm:$0xff] }
  0x81   : > { %2984 = vmatprep.mubr.msk.f32.mxu0 %vm446_vm0, %v2631_v29  ;;  %3733 = vmatpush3.bf16.msra.mxu0 %v3732_v23  ;;  %v1005_v29 = vld [vmem:[#allocation5 + $0x48] sm:$0xff]  ;;  %v1290_v18 = vld [vmem:[#allocation5 + $0x1a0] sm:$0xff]  ;;  %v1292_v23 = vld [vmem:[#allocation5 + $0x1b0] sm:$0xff] }
  0x82   : > { %3558 = vmatpush3.bf16.msra.mxu1 %v3555_v33  ;;  %3734 = vmatprep.subr.bf16.mxu0 %v4240_v19  ;;  %v3595_v32 = vpack.c.bf16 %v1005_v29, %v1004_v28  ;;  %v3651_v22 = vpack.c.bf16 %v1291_v20, %v1290_v18  ;;  %v1293_v24 = vld [vmem:[#allocation5 + $0x1b8] sm:$0xff]  ;;  %v1296_v29 = vld [vmem:[#allocation5 + $0x1d0] sm:$0xff] }
  0x83   : > { %3560 = vmatprep.subr.bf16.mxu1 %v3559_v36  ;;  %v3655_v25 = vpack.c.bf16 %v1293_v24, %v1292_v23  ;;  %v1300_v35 = vld [vmem:[#allocation5 + $0x1f0] sm:$0xff]  ;;  %v1522_v23 = vld [vmem:[#allocation8 + $0xe0] sm:$0xff]  ;;  %v1523_v24 = vld [vmem:[#allocation8 + $0xe8] sm:$0xff] }
  0x84   : > { %2985 = vmatmul.mubr.msk.f32.gmra.mrb[2].mxu0 %vm446_vm0, %v2632_v30  ;;  %v1495_v30 = vld [vmem:[#allocation8 + $0x20] sm:$0xff]  ;;  %v1386_v41 = vld [vmem:[#allocation5 + $0x210] sm:$0xff] }
  0x85   : > { %3736 = vmatpush3.bf16.msra.mxu0 %v3735_v27  ;;  %v3738_v33 = vpack.c.bf16 %v1496_v31, %v1495_v30  ;;  %v1295_v27 = vld [vmem:[#allocation5 + $0x1c8] sm:$0xff]  ;;  %v1297_v30 = vld [vmem:[#allocation5 + $0x1d8] sm:$0xff]  ;;  %v1501_v18 = vld [vmem:[#allocation8 + $0x50] sm:$0xff] }
  0x86   : > { %3562 = vmatpush3.bf16.msra.mxu1 %v3559_v36  ;;  %3737 = vmatprep.subr.bf16.mxu0 %v4240_v19  ;;  %v1497_v36 = vld [vmem:[#allocation8 + $0x30] sm:$0xff]  ;;  %v3663_v31 = vpack.c.bf16 %v1297_v30, %v1296_v29  ;;  %v1525_v29 = vld [vmem:[#allocation8 + $0xf8] sm:$0xff] }
  0x87   : > { %3564 = vmatprep.subr.bf16.mxu1 %v3563_v39 }
  0x89   : > { %3739 = vmatpush3.bf16.msra.mxu0 %v3738_v33  ;;  %v1299_v33 = vld [vmem:[#allocation5 + $0x1e8] sm:$0xff] }
  0x8a   : > { %3566 = vmatpush3.bf16.msra.mxu1 %v3563_v39  ;;  %v3741_v39 = vpack.c.bf16 %v1498_v37, %v1497_v36  ;;  %3740 = vmatprep.subr.bf16.mxu0 %v4240_v19  ;;  %v1301_v36 = vld [vmem:[#allocation5 + $0x1f8] sm:$0xff] }
  0x8b   : > { %3568 = vmatprep.subr.bf16.mxu1 %v3567_v42  ;;  %v3671_v37 = vpack.c.bf16 %v1301_v36, %v1300_v35  ;;  %v2639_v36 = vld [vmem:[%s4754_s4] ss:$0 sm:$0xff] }
  0x8d   : > { %3742 = vmatpush3.bf16.msra.mxu0 %v3741_v39  ;;  %v1385_v39 = vld [vmem:[#allocation5 + $0x208] sm:$0xff] }
  0x8e   : > { %3570 = vmatpush3.bf16.msra.mxu1 %v3567_v42  ;;  %v1499_v42 = vld [vmem:[#allocation8 + $0x40] sm:$0xff]  ;;  %3743 = vmatprep.subr.bf16.mxu0 %v4240_v19 }
  0x8f   : > { %3572 = vmatprep.subr.bf16.mxu1 %v3571_v45 }
  0x92   : > { %3574 = vmatpush3.bf16.msra.mxu1 %v3571_v45  ;;  %v3744_v45 = vpack.c.bf16 %v1500_v43, %v1499_v42  ;;  %v1387_v42 = vld [vmem:[#allocation5 + $0x218] sm:$0xff] }
  0x93   : > { %3576 = vmatprep.subr.bf16.mxu1 %v3575_v48  ;;  %v3679_v43 = vpack.c.bf16 %v1387_v42, %v1386_v41 }
  0x94   : > { %3745 = vmatpush3.bf16.msra.mxu0 %v3744_v45  ;;  %v1388_v45 = vld [vmem:[#allocation5 + $0x220] sm:$0xff] }
  0x95   : > { %3746 = vmatprep.subr.bf16.mxu0 %v4240_v19 }
  0x96   : > { %3578 = vmatpush3.bf16.msra.mxu1 %v3575_v48  ;;  %v3607_v48 = vpack.c.bf16 %v1011_v47, %v1010_v46  ;;  %v1389_v46 = vld [vmem:[#allocation5 + $0x228] sm:$0xff] }
  0x97   : > { %3580 = vmatprep.subr.bf16.mxu1 %v3579_v51 }
 0x14b   : > { %v2959_v52 = vpop.f32.mrb[0].mxu1 }
 0x14c   : > { %v622_v53 = vpop.f32.mrb[1].mxu1 }
 0x14f   : > { %v2962_v54 = vpop.f32.mrb[2].mxu1 }
 0x150   : > { %v632_v55 = vpop.f32.mrb[3].mxu1 }
 0x153   : > { %v2983_v56 = vpop.f32.mrb[0].mxu0 }
 0x154   : > { %v3971_v58 = vadd.f32 %v2983_v56, %v2959_v52  ;;  %v951_v59 = vpop.f32.mrb[1].mxu0  ;;  %v1190_v52 = vld [vmem:[#allocation5 + $0x110] sm:$0xff]  ;;  %v1192_v56 = vld [vmem:[#allocation5 + $0x120] sm:$0xff] }
 0x155   : > { %v3972_v60 = vadd.f32 %v951_v59, %v622_v53  ;;  %v1191_v53 = vld [vmem:[#allocation5 + $0x118] sm:$0xff] }
 0x156   : > { %v982_v61 = vadd.f32 %v3971_v58, %v2638_v57 }
 0x157   : > { %v981_v62 = vadd.f32 %v3972_v60, %v2638_v57  ;;  %v2986_v63 = vpop.f32.mrb[2].mxu0  ;;  %v1194_v60 = vld [vmem:[#allocation5 + $0x130] sm:$0xff] }
 0x158   : > { %v986_v0 = vmax.f32 %v982_v61, 0.0  ;;  %v3973_v1 = vadd.f32 %v2986_v63, %v2962_v54  ;;  %v961_v2 = vpop.f32.mrb[3].mxu0  ;;  %v3615_v54 = vpack.c.bf16 %v1191_v53, %v1190_v52  ;;  %v1195_v61 = vld [vmem:[#allocation5 + $0x138] sm:$0xff]  ;;  %v1196_v63 = vld [vmem:[#allocation5 + $0x140] sm:$0xff]  ;;  %v1393_v53 = vld [vmem:[#allocation5 + $0x248] sm:$0xff] }
 0x159   : > { %v985_v3 = vmax.f32 %v981_v62, 0.0  ;;  %v3974_v4 = vadd.f32 %v961_v2, %v632_v55  ;;  %v3623_v62 = vpack.c.bf16 %v1195_v61, %v1194_v60  ;;  %v1198_v2 = vld [vmem:[#allocation5 + $0x150] sm:$0xff]  ;;  %v1392_v52 = vld [vmem:[#allocation5 + $0x240] sm:$0xff] }
 0x15a   : > { %990 = vst [vmem:[#allocation2 + $0x8] sm:$0xff] %v986_v0  ;;  %v984_v5 = vadd.f32 %v3973_v1, %v2638_v57  ;;  %v1197_v0 = vld [vmem:[#allocation5 + $0x148] sm:$0xff]  ;;  %v1398_v61 = vld [vmem:[#allocation5 + $0x270] sm:$0xff] }
 0x15b   : > { %989 = vst [vmem:[#allocation2] sm:$0xff] %v985_v3  ;;  %v983_v6 = vadd.f32 %v3974_v4, %v2638_v57  ;;  %v1193_v57 = vld [vmem:[#allocation5 + $0x128] sm:$0xff]  ;;  %v3627_v1 = vpack.c.bf16 %v1197_v0, %v1196_v63  ;;  %v1199_v3 = vld [vmem:[#allocation5 + $0x158] sm:$0xff]  ;;  %v1510_v0 = vld [vmem:[#allocation8 + $0x80] sm:$0xff] }
 0x15c   : > { %v988_v7 = vmax.f32 %v984_v5, 0.0  ;;  %v3619_v59 = vpack.c.bf16 %v1193_v57, %v1192_v56  ;;  %v3631_v4 = vpack.c.bf16 %v1199_v3, %v1198_v2  ;;  %v1200_v5 = vld [vmem:[#allocation5 + $0x160] sm:$0xff]  ;;  %v1395_v56 = vld [vmem:[#allocation5 + $0x258] sm:$0xff]  ;;  %v1512_v3 = vld [vmem:[#allocation8 + $0x90] sm:$0xff] }
 0x15d   : > { %v987_v8 = vmax.f32 %v983_v6, 0.0  ;;  %v1201_v6 = vld [vmem:[#allocation5 + $0x168] sm:$0xff] }
 0x15e   : > { %992 = vst [vmem:[#allocation2 + $0x18] sm:$0x3f] %v988_v7  ;;  %v3635_v7 = vpack.c.bf16 %v1201_v6, %v1200_v5 }
 0x15f   : > { %991 = vst [vmem:[#allocation2 + $0x10] sm:$0xff] %v987_v8  ;;  %v1202_v8 = vld [vmem:[#allocation5 + $0x170] sm:$0xff] }
 0x162   : > { %v1013_v9 = vld [vmem:[#allocation2 + $0x1] ss:$2 sm:$0xff]  ;;  %v993_v16 = vld [vmem:[#allocation2] ss:$2 sm:$0xff] }
 0x163   : > { %3019 = vmatprep.mubr.f32.mxu1 %v1013_v9  ;;  %v1203_v9 = vld [vmem:[#allocation5 + $0x178] sm:$0xff] }
 0x164   : > { %v3639_v10 = vpack.c.bf16 %v1203_v9, %v1202_v8  ;;  %v1515_v8 = vld [vmem:[#allocation8 + $0xa8] sm:$0xff] }
 0x166   : > { %v1015_v13 = vld [vmem:[#allocation2 + $0x11] ss:$2 sm:$0x1f]  ;;  %v995_v55 = vld [vmem:[#allocation2 + $0x10] ss:$2 sm:$0x1f] }
 0x167   : > { %3020 = vmatmul.mubr.f32.vlgmr.msra.gmra.mrb[4].mxu1 %v1015_v13  ;;  %v1184_v58 = vld [vmem:[#allocation2 + $0x2] ss:$2 sm:$0xff]  ;;  %v1282_v21 = vld [vmem:[#allocation2 + $0x3] ss:$2 sm:$0xff] }
 0x168   : > { %3582 = vmatpush3.bf16.msra.mxu1 %v3579_v51  ;;  %3054 = vmatprep.mubr.f32.mxu1 %v993_v16  ;;  %v3611_v51 = vpack.c.bf16 %v1189_v50, %v1188_v49  ;;  %v3647_v16 = vpack.c.bf16 %v1289_v15, %v1288_v14  ;;  %v1380_v47 = vld [vmem:[#allocation2 + $0x4] ss:$2 sm:$0xff]  ;;  %v1382_v5 = vld [vmem:[#allocation2 + $0x14] ss:$2 sm:$0x1f] }
 0x169   : > { %3584 = vmatprep.subr.bf16.mxu1 %v3583_v12  ;;  %v1390_v49 = vld [vmem:[#allocation5 + $0x230] sm:$0xff]  ;;  %v1391_v50 = vld [vmem:[#allocation5 + $0x238] sm:$0xff]  ;;  %v1519_v14 = vld [vmem:[#allocation8 + $0xc8] sm:$0xff] }
 0x16c   : > { %3586 = vmatpush3.bf16.msra.mxu1 %v3583_v12  ;;  %v1287_v12 = vld [vmem:[#allocation5 + $0x188] sm:$0xff] }
 0x16d   : > { %3588 = vmatprep.subr.bf16.mxu1 %v3587_v17  ;;  %v3643_v13 = vpack.c.bf16 %v1287_v12, %v1286_v11  ;;  %v1517_v11 = vld [vmem:[#allocation8 + $0xb8] sm:$0xff] }
 0x170   : > { %3590 = vmatpush3.bf16.msra.mxu1 %v3587_v17  ;;  %v1186_v17 = vld [vmem:[#allocation2 + $0x12] ss:$2 sm:$0x1f] }
 0x171   : > { %3592 = vmatprep.subr.bf16.mxu1 %v3591_v26 }
 0x174   : > { %3594 = vmatpush3.bf16.msra.mxu1 %v3591_v26  ;;  %v1294_v26 = vld [vmem:[#allocation5 + $0x1c0] sm:$0xff] }
 0x175   : > { %3596 = vmatprep.subr.bf16.mxu1 %v3595_v32  ;;  %v3659_v28 = vpack.c.bf16 %v1295_v27, %v1294_v26  ;;  %v3726_v26 = vpack.c.bf16 %v1523_v24, %v1522_v23  ;;  %v1504_v27 = vld [vmem:[#allocation8 + $0x68] sm:$0xff]  ;;  %v1683_v24 = vld [vmem:[#allocation8 + $0x170] sm:$0xff] }
 0x178   : > { %3598 = vmatpush3.bf16.msra.mxu1 %v3595_v32  ;;  %v1298_v32 = vld [vmem:[#allocation5 + $0x1e0] sm:$0xff] }
 0x179   : > { %3600 = vmatprep.subr.bf16.mxu1 %v3599_v38  ;;  %v3667_v34 = vpack.c.bf16 %v1299_v33, %v1298_v32  ;;  %v1506_v32 = vld [vmem:[#allocation8 + $0x78] sm:$0xff]  ;;  %v4242_v33 = vmov 0.0  }
 0x17a   : > { %3229 = vmatprep.mubr.msk.f32.mxu0 %vm4241_vm1, %v4242_v33 }
 0x17c   : > { %3602 = vmatpush3.bf16.msra.mxu1 %v3599_v38  ;;  %v1384_v38 = vld [vmem:[#allocation5 + $0x200] sm:$0xff] }
 0x17d   : > { %3604 = vmatprep.subr.bf16.mxu1 %v3603_v44  ;;  %v3675_v40 = vpack.c.bf16 %v1385_v39, %v1384_v38 }
 0x180   : > { %3606 = vmatpush3.bf16.msra.mxu1 %v3603_v44  ;;  %v1284_v44 = vld [vmem:[#allocation2 + $0x13] ss:$2 sm:$0x1f] }
 0x181   : > { %3608 = vmatprep.subr.bf16.mxu1 %v3607_v48 }
 0x184   : > { %3610 = vmatpush3.bf16.msra.mxu1 %v3607_v48  ;;  %v3683_v48 = vpack.c.bf16 %v1389_v46, %v1388_v45  ;;  %v1849_v45 = vld [vmem:[#allocation8 + $0x200] sm:$0xff]  ;;  %v1850_v46 = vld [vmem:[#allocation8 + $0x208] sm:$0xff] }
 0x185   : > { %3612 = vmatprep.subr.bf16.mxu1 %v3611_v51 }
 0x187   : > { %3055 = vmatmul.mubr.f32.vlgmr.msra.gmra.mrb[4].mxu1 %v995_v55  ;;  %v1394_v55 = vld [vmem:[#allocation5 + $0x250] sm:$0xff] }
 0x188   : > { %3614 = vmatpush3.bf16.msra.mxu1 %v3611_v51  ;;  %3089 = vmatprep.mubr.f32.mxu1 %v1184_v58  ;;  %v3687_v51 = vpack.c.bf16 %v1391_v50, %v1390_v49  ;;  %v3695_v57 = vpack.c.bf16 %v1395_v56, %v1394_v55  ;;  %v1396_v58 = vld [vmem:[#allocation5 + $0x260] sm:$0xff]  ;;  %v1671_v49 = vld [vmem:[#allocation8 + $0x110] sm:$0xff]  ;;  %v1672_v50 = vld [vmem:[#allocation8 + $0x118] sm:$0xff] }
 0x189   : > { %3616 = vmatprep.subr.bf16.mxu1 %v3615_v54  ;;  %v3759_v55 = vpack.c.bf16 %v1672_v50, %v1671_v49  ;;  %v1770_v49 = vld [vmem:[#allocation8 + $0x1d8] sm:$0xff] }
 0x18c   : > { %3618 = vmatpush3.bf16.msra.mxu1 %v3615_v54  ;;  %v3691_v54 = vpack.c.bf16 %v1393_v53, %v1392_v52  ;;  %v1852_v52 = vld [vmem:[#allocation8 + $0x218] sm:$0xff] }
 0x18d   : > { %3620 = vmatprep.subr.bf16.mxu1 %v3619_v59 }
 0x190   : > { %3622 = vmatpush3.bf16.msra.mxu1 %v3619_v59  ;;  %v1397_v59 = vld [vmem:[#allocation5 + $0x268] sm:$0xff] }
 0x191   : > { %3624 = vmatprep.subr.bf16.mxu1 %v3623_v62  ;;  %v3699_v60 = vpack.c.bf16 %v1397_v59, %v1396_v58  ;;  %v1674_v58 = vld [vmem:[#allocation8 + $0x128] sm:$0xff]  ;;  %v1853_v59 = vld [vmem:[#allocation8 + $0x220] sm:$0xff] }
 0x194   : > { %3626 = vmatpush3.bf16.msra.mxu1 %v3623_v62  ;;  %v1399_v62 = vld [vmem:[#allocation5 + $0x278] sm:$0xff] }
 0x195   : > { %3628 = vmatprep.subr.bf16.mxu1 %v3627_v1  ;;  %v3703_v63 = vpack.c.bf16 %v1399_v62, %v1398_v61 }
 0x198   : > { %3630 = vmatpush3.bf16.msra.mxu1 %v3627_v1  ;;  %v1511_v1 = vld [vmem:[#allocation8 + $0x88] sm:$0xff] }
 0x199   : > { %3632 = vmatprep.subr.bf16.mxu1 %v3631_v4  ;;  %v3708_v2 = vpack.c.bf16 %v1511_v1, %v1510_v0  ;;  %v1676_v0 = vld [vmem:[#allocation8 + $0x138] sm:$0xff]  ;;  %v1855_v1 = vld [vmem:[#allocation8 + $0x230] sm:$0xff] }
 0x19c   : > { %3634 = vmatpush3.bf16.msra.mxu1 %v3631_v4  ;;  %v1513_v4 = vld [vmem:[#allocation8 + $0x98] sm:$0xff] }
 0x19d   : > { %3636 = vmatprep.subr.bf16.mxu1 %v3635_v7  ;;  %v3711_v6 = vpack.c.bf16 %v1513_v4, %v1512_v3 }
 0x1a0   : > { %3638 = vmatpush3.bf16.msra.mxu1 %v3635_v7  ;;  %v1514_v7 = vld [vmem:[#allocation8 + $0xa0] sm:$0xff] }
 0x1a1   : > { %3640 = vmatprep.subr.bf16.mxu1 %v3639_v10  ;;  %v3714_v9 = vpack.c.bf16 %v1515_v8, %v1514_v7  ;;  %v1857_v7 = vld [vmem:[#allocation8 + $0x240] sm:$0xff]  ;;  %v1858_v8 = vld [vmem:[#allocation8 + $0x248] sm:$0xff] }
 0x1a4   : > { %3642 = vmatpush3.bf16.msra.mxu1 %v3639_v10  ;;  %v1516_v10 = vld [vmem:[#allocation8 + $0xb0] sm:$0xff] }
 0x1a5   : > { %3644 = vmatprep.subr.bf16.mxu1 %v3643_v13  ;;  %v3717_v12 = vpack.c.bf16 %v1517_v11, %v1516_v10  ;;  %v3816_v10 = vpack.c.bf16 %v1858_v8, %v1857_v7  ;;  %v1679_v11 = vld [vmem:[#allocation8 + $0x150] sm:$0xff]  ;;  %v1957_v7 = vld [vmem:[#allocation10 + $0x48] sm:$0xff] }
 0x1a7   : > { %3090 = vmatmul.mubr.f32.vlgmr.msra.gmra.mrb[4].mxu1 %v1186_v17  ;;  %v1521_v17 = vld [vmem:[#allocation8 + $0xd8] sm:$0xff] }
 0x1a8   : > { %3646 = vmatpush3.bf16.msra.mxu1 %v3643_v13  ;;  %3124 = vmatprep.mubr.f32.mxu1 %v1282_v21  ;;  %v1518_v13 = vld [vmem:[#allocation8 + $0xc0] sm:$0xff]  ;;  %v1502_v21 = vld [vmem:[#allocation8 + $0x58] sm:$0xff] }
 0x1a9   : > { %3648 = vmatprep.subr.bf16.mxu1 %v3647_v16  ;;  %v3720_v15 = vpack.c.bf16 %v1519_v14, %v1518_v13  ;;  %v1859_v13 = vld [vmem:[#allocation8 + $0x250] sm:$0xff]  ;;  %v1860_v14 = vld [vmem:[#allocation8 + $0x258] sm:$0xff] }
 0x1ac   : > { %3650 = vmatpush3.bf16.msra.mxu1 %v3647_v16  ;;  %v1520_v16 = vld [vmem:[#allocation8 + $0xd0] sm:$0xff] }
 0x1ad   : > { %3652 = vmatprep.subr.bf16.mxu1 %v3651_v22  ;;  %v3723_v20 = vpack.c.bf16 %v1521_v17, %v1520_v16  ;;  %v3819_v16 = vpack.c.bf16 %v1860_v14, %v1859_v13  ;;  %v1681_v17 = vld [vmem:[#allocation8 + $0x160] sm:$0xff]  ;;  %v1961_v13 = vld [vmem:[#allocation10 + $0x68] sm:$0xff] }
 0x1b0   : > { %3654 = vmatpush3.bf16.msra.mxu1 %v3651_v22  ;;  %v3747_v22 = vpack.c.bf16 %v1502_v21, %v1501_v18  ;;  %v1682_v18 = vld [vmem:[#allocation8 + $0x168] sm:$0xff] }
 0x1b1   : > { %3656 = vmatprep.subr.bf16.mxu1 %v3655_v25  ;;  %v1862_v21 = vld [vmem:[#allocation8 + $0x268] sm:$0xff] }
 0x1b2   : > { %3748 = vmatpush3.bf16.msra.mxu0 %v3747_v22  ;;  %v3774_v22 = vpack.c.bf16 %v1682_v18, %v1681_v17 }
 0x1b3   : > { %3749 = vmatprep.subr.bf16.mxu0 %v4240_v19 }
 0x1b4   : > { %3658 = vmatpush3.bf16.msra.mxu1 %v3655_v25  ;;  %v1503_v25 = vld [vmem:[#allocation8 + $0x60] sm:$0xff] }
 0x1b5   : > { %3660 = vmatprep.subr.bf16.mxu1 %v3659_v28  ;;  %v3750_v30 = vpack.c.bf16 %v1504_v27, %v1503_v25  ;;  %v1684_v25 = vld [vmem:[#allocation8 + $0x178] sm:$0xff] }
 0x1b6   : > { %v1864_v27 = vld [vmem:[#allocation8 + $0x278] sm:$0xff] }
 0x1b7   : > { %3751 = vmatpush3.bf16.msra.mxu0 %v3750_v30  ;;  %v1759_v30 = vld [vmem:[#allocation8 + $0x180] sm:$0xff] }
 0x1b8   : > { %3662 = vmatpush3.bf16.msra.mxu1 %v3659_v28  ;;  %v1524_v28 = vld [vmem:[#allocation8 + $0xf0] sm:$0xff]  ;;  %3752 = vmatprep.subr.bf16.mxu0 %v4240_v19 }
 0x1b9   : > { %3664 = vmatprep.subr.bf16.mxu1 %v3663_v31 }
 0x1bc   : > { %3666 = vmatpush3.bf16.msra.mxu1 %v3663_v31  ;;  %v1505_v31 = vld [vmem:[#allocation8 + $0x70] sm:$0xff] }
 0x1bd   : > { %3668 = vmatprep.subr.bf16.mxu1 %v3667_v34  ;;  %v3753_v35 = vpack.c.bf16 %v1506_v32, %v1505_v31  ;;  %v1760_v31 = vld [vmem:[#allocation8 + $0x188] sm:$0xff] }
 0x1be   : > { %v3780_v32 = vpack.c.bf16 %v1760_v31, %v1759_v30 }
 0x1bf   : > { %3754 = vmatpush3.bf16.msra.mxu0 %v3753_v35  ;;  %v1762_v35 = vld [vmem:[#allocation8 + $0x198] sm:$0xff] }
 0x1c0   : > { %3670 = vmatpush3.bf16.msra.mxu1 %v3667_v34  ;;  %v3729_v34 = vpack.c.bf16 %v1525_v29, %v1524_v28  ;;  %3755 = vmatprep.subr.bf16.mxu0 %v4240_v19  ;;  %v3777_v28 = vpack.c.bf16 %v1684_v25, %v1683_v24 }
 0x1c1   : > { %3672 = vmatprep.subr.bf16.mxu1 %v3671_v37 }
 0x1c4   : > { %3674 = vmatpush3.bf16.msra.mxu1 %v3671_v37 }
 0x1c5   : > { %3676 = vmatprep.subr.bf16.mxu1 %v3675_v40 }
 0x1c7   : > { %3125 = vmatmul.mubr.f32.vlgmr.msra.gmra.mrb[4].mxu1 %v1284_v44  ;;  %v1670_v44 = vld [vmem:[#allocation8 + $0x108] sm:$0xff] }
 0x1c8   : > { %3678 = vmatpush3.bf16.msra.mxu1 %v3675_v40  ;;  %3159 = vmatprep.mubr.f32.mxu1 %v1380_v47 }
 0x1c9   : > { %3680 = vmatprep.subr.bf16.mxu1 %v3679_v43 }
 0x1cc   : > { %3682 = vmatpush3.bf16.msra.mxu1 %v3679_v43  ;;  %v1669_v43 = vld [vmem:[#allocation8 + $0x100] sm:$0xff] }
 0x1cd   : > { %3684 = vmatprep.subr.bf16.mxu1 %v3683_v48  ;;  %v3756_v47 = vpack.c.bf16 %v1670_v44, %v1669_v43  ;;  %v1766_v43 = vld [vmem:[#allocation8 + $0x1b8] sm:$0xff] }
 0x1d0   : > { %3686 = vmatpush3.bf16.msra.mxu1 %v3683_v48  ;;  %v3804_v48 = vpack.c.bf16 %v1850_v46, %v1849_v45  ;;  %v1767_v45 = vld [vmem:[#allocation8 + $0x1c0] sm:$0xff]  ;;  %v1768_v46 = vld [vmem:[#allocation8 + $0x1c8] sm:$0xff] }
 0x1d1   : > { %3688 = vmatprep.subr.bf16.mxu1 %v3687_v51 }
 0x1d4   : > { %3690 = vmatpush3.bf16.msra.mxu1 %v3687_v51  ;;  %v1851_v51 = vld [vmem:[#allocation8 + $0x210] sm:$0xff] }
 0x1d5   : > { %3692 = vmatprep.subr.bf16.mxu1 %v3691_v54  ;;  %v3807_v56 = vpack.c.bf16 %v1852_v52, %v1851_v51  ;;  %v1771_v51 = vld [vmem:[#allocation8 + $0x1e0] sm:$0xff]  ;;  %v1772_v52 = vld [vmem:[#allocation8 + $0x1e8] sm:$0xff] }
 0x1d8   : > { %3694 = vmatpush3.bf16.msra.mxu1 %v3691_v54 }
 0x1d9   : > { %3696 = vmatprep.subr.bf16.mxu1 %v3695_v57 }
 0x1dc   : > { %3698 = vmatpush3.bf16.msra.mxu1 %v3695_v57  ;;  %v1673_v57 = vld [vmem:[#allocation8 + $0x120] sm:$0xff] }
 0x1dd   : > { %3700 = vmatprep.subr.bf16.mxu1 %v3699_v60  ;;  %v3762_v61 = vpack.c.bf16 %v1674_v58, %v1673_v57  ;;  %v1948_v58 = vld [vmem:[#allocation10] sm:$0xff] }
 0x1e0   : > { %3702 = vmatpush3.bf16.msra.mxu1 %v3699_v60  ;;  %v1854_v60 = vld [vmem:[#allocation8 + $0x228] sm:$0xff] }
 0x1e1   : > { %3704 = vmatprep.subr.bf16.mxu1 %v3703_v63  ;;  %v3810_v62 = vpack.c.bf16 %v1854_v60, %v1853_v59  ;;  %v1949_v59 = vld [vmem:[#allocation10 + $0x8] sm:$0xff]  ;;  %v1950_v60 = vld [vmem:[#allocation10 + $0x10] sm:$0xff] }
 0x1e4   : > { %3706 = vmatpush3.bf16.msra.mxu1 %v3703_v63  ;;  %v1675_v63 = vld [vmem:[#allocation8 + $0x130] sm:$0xff] }
 0x1e5   : > { %3707 = vmatprep.subr.bf16.mxu1 %v4240_v19  ;;  %v3765_v3 = vpack.c.bf16 %v1676_v0, %v1675_v63  ;;  %v1952_v0 = vld [vmem:[#allocation10 + $0x20] sm:$0xff] }
 0x1e7   : > { %3160 = vmatmul.mubr.f32.vlgmr.msra.gmra.mrb[4].mxu1 %v1382_v5  ;;  %v1677_v5 = vld [vmem:[#allocation8 + $0x140] sm:$0xff] }
 0x1e8   : > { %3709 = vmatpush3.bf16.msra.mxu1 %v3708_v2  ;;  %3194 = vmatprep.mubr.msk.f32.mxu1 %vm4241_vm1, %v4242_v33  ;;  %v1856_v2 = vld [vmem:[#allocation8 + $0x238] sm:$0xff] }
 0x1e9   : > { %3710 = vmatprep.subr.bf16.mxu1 %v4240_v19  ;;  %v3813_v4 = vpack.c.bf16 %v1856_v2, %v1855_v1  ;;  %v1953_v1 = vld [vmem:[#allocation10 + $0x28] sm:$0xff] }
 0x1ea   : > { %v3834_v2 = vpack.c.bf16 %v1953_v1, %v1952_v0  ;;  %v2404_v0 = vld [vmem:[%s4759_s9 + $0x40] sm:$0xff]  ;;  %v2405_v1 = vld [vmem:[%s4759_s9 + $0x48] sm:$0xff] }
 0x1ec   : > { %3712 = vmatpush3.bf16.msra.mxu1 %v3711_v6  ;;  %v1678_v6 = vld [vmem:[#allocation8 + $0x148] sm:$0xff] }
 0x1ed   : > { %3713 = vmatprep.subr.bf16.mxu1 %v4240_v19 }
 0x1f0   : > { %3715 = vmatpush3.bf16.msra.mxu1 %v3714_v9  ;;  %v3768_v9 = vpack.c.bf16 %v1678_v6, %v1677_v5  ;;  %v1956_v6 = vld [vmem:[#allocation10 + $0x40] sm:$0xff] }
 0x1f1   : > { %3716 = vmatprep.subr.bf16.mxu1 %v4240_v19  ;;  %v3840_v8 = vpack.c.bf16 %v1957_v7, %v1956_v6  ;;  %v2406_v6 = vld [vmem:[%s4759_s9 + $0x50] sm:$0xff]  ;;  %v2407_v7 = vld [vmem:[%s4759_s9 + $0x58] sm:$0xff] }
 0x1f4   : > { %3718 = vmatpush3.bf16.msra.mxu1 %v3717_v12  ;;  %v1680_v12 = vld [vmem:[#allocation8 + $0x158] sm:$0xff] }
 0x1f5   : > { %3719 = vmatprep.subr.bf16.mxu1 %v4240_v19 }
 0x1f8   : > { %3721 = vmatpush3.bf16.msra.mxu1 %v3720_v15  ;;  %v3771_v15 = vpack.c.bf16 %v1680_v12, %v1679_v11  ;;  %v1960_v12 = vld [vmem:[#allocation10 + $0x60] sm:$0xff] }
 0x1f9   : > { %3722 = vmatprep.subr.bf16.mxu1 %v4240_v19  ;;  %v3846_v14 = vpack.c.bf16 %v1961_v13, %v1960_v12  ;;  %v2408_v12 = vld [vmem:[%s4759_s9 + $0x60] sm:$0xff]  ;;  %v2409_v13 = vld [vmem:[%s4759_s9 + $0x68] sm:$0xff] }
 0x1fc   : > { %3724 = vmatpush3.bf16.msra.mxu1 %v3723_v20  ;;  %v1861_v20 = vld [vmem:[#allocation8 + $0x260] sm:$0xff] }
 0x1fd   : > { %3725 = vmatprep.subr.bf16.mxu1 %v4240_v19  ;;  %v3822_v23 = vpack.c.bf16 %v1862_v21, %v1861_v20 }
 0x200   : > { %3727 = vmatpush3.bf16.msra.mxu1 %v3726_v26  ;;  %v1863_v26 = vld [vmem:[#allocation8 + $0x270] sm:$0xff] }
 0x201   : > { %3728 = vmatprep.subr.bf16.mxu1 %v4240_v19  ;;  %v3825_v29 = vpack.c.bf16 %v1864_v27, %v1863_v26 }
 0x204   : > { %3730 = vmatpush3.bf16.msra.mxu1 %v3729_v34  ;;  %v1761_v34 = vld [vmem:[#allocation8 + $0x190] sm:$0xff] }
 0x205   : > { %3803 = vmatprep.subr.bf16.mxu1 %v4240_v19 }
 0x2ba   : > { %v3161_v37 = vpop.f32.mrb[4].mxu1 }
 0x2bb   : > { %v1485_v38 = vadd.f32 %v3161_v37, %v2639_v36  ;;  %v1466_v39 = vpop.f32.mrb[5].mxu1 }
 0x2bc   : > { %v1484_v40 = vadd.f32 %v2639_v36, %v1466_v39  ;;  %v1763_v39 = vld [vmem:[#allocation8 + $0x1a0] sm:$0xff] }
 0x2bd   : > { %v1487_v41 = vmax.f32 %v1485_v38, 0.0  ;;  %v3783_v38 = vpack.c.bf16 %v1762_v35, %v1761_v34 }
 0x2be   : > { %v1486_v42 = vmax.f32 %v1484_v40, 0.0  ;;  %v1764_v40 = vld [vmem:[#allocation8 + $0x1a8] sm:$0xff] }
 0x2bf   : > { %1489 = vst [vmem:[#allocation3 + $0x8] sm:$0x1f] %v1487_v41  ;;  %v3786_v41 = vpack.c.bf16 %v1764_v40, %v1763_v39  ;;  %v2038_v40 = vld [vmem:[#allocation10 + $0x90] sm:$0xff] }
 0x2c0   : > { %1488 = vst [vmem:[#allocation3] sm:$0xff] %v1486_v42  ;;  %v1765_v42 = vld [vmem:[#allocation8 + $0x1b0] sm:$0xff] }
 0x2c1   : > { %v3789_v44 = vpack.c.bf16 %v1766_v43, %v1765_v42  ;;  %v2396_v43 = vld [vmem:[%s4759_s9] sm:$0xff] }
 0x2c7   : > { %v1508_v53 = vld [vmem:[#allocation3 + $0x1] ss:$2 sm:$0x1f]  ;;  %v1490_v54 = vld [vmem:[#allocation3] ss:$2 sm:$0x1f] }
 0x2c8   : > { %3195 = vmatmul.mubr.f32.vlgmr.msra.gmra.mrb[6].mxu1 %v1508_v53  ;;  %3230 = vmatmul.mubr.f32.vlgmr.msra.gmra.mrb[4].mxu0 %v1490_v54  ;;  %v1667_v36 = vld [vmem:[#allocation3 + $0x2] ss:$2 sm:$0x1f]  ;;  %v3798_v53 = vpack.c.bf16 %v1772_v52, %v1771_v51  ;;  %v1757_v57 = vld [vmem:[#allocation3 + $0x3] ss:$2 sm:$0x1f] }
 0x2c9   : > { %3757 = vmatpush3.bf16.msra.mxu0 %v3756_v47  ;;  %3805 = vmatpush3.bf16.msra.mxu1 %v3804_v48  ;;  %v1847_v37 = vld [vmem:[#allocation3 + $0x4] ss:$2 sm:$0x1f]  ;;  %v3792_v47 = vpack.c.bf16 %v1768_v46, %v1767_v45 }
 0x2ca   : > { %3758 = vmatprep.subr.bf16.mxu0 %v4240_v19  ;;  %3806 = vmatprep.subr.bf16.mxu1 %v4240_v19  ;;  %v1769_v48 = vld [vmem:[#allocation8 + $0x1d0] sm:$0xff]  ;;  %v2400_v52 = vld [vmem:[%s4759_s9 + $0x20] sm:$0xff] }
 0x2cb   : > { %3264 = vmatprep.mubr.msk.f32.mxu0 %vm4241_vm1, %v4242_v33  ;;  %3334 = vmatprep.mubr.msk.f32.mxu1 %vm4241_vm1, %v4242_v33  ;;  %v3795_v50 = vpack.c.bf16 %v1770_v49, %v1769_v48  ;;  %v1773_v54 = vld [vmem:[#allocation8 + $0x1f0] sm:$0xff]  ;;  %v2399_v48 = vld [vmem:[%s4759_s9 + $0x18] sm:$0xff] }
 0x2cc   : > { %v2040_v49 = vld [vmem:[#allocation10 + $0xa0] sm:$0xff] }
 0x2cd   : > { %3760 = vmatpush3.bf16.msra.mxu0 %v3759_v55  ;;  %3808 = vmatpush3.bf16.msra.mxu1 %v3807_v56  ;;  %v1774_v55 = vld [vmem:[#allocation8 + $0x1f8] sm:$0xff] }
 0x2ce   : > { %3761 = vmatprep.subr.bf16.mxu0 %v4240_v19  ;;  %3809 = vmatprep.subr.bf16.mxu1 %v4240_v19  ;;  %v3801_v56 = vpack.c.bf16 %v1774_v55, %v1773_v54  ;;  %v2042_v55 = vld [vmem:[#allocation10 + $0xb0] sm:$0xff] }
 0x2d1   : > { %3763 = vmatpush3.bf16.msra.mxu0 %v3762_v61  ;;  %3811 = vmatpush3.bf16.msra.mxu1 %v3810_v62  ;;  %v3828_v61 = vpack.c.bf16 %v1949_v59, %v1948_v58  ;;  %v1951_v62 = vld [vmem:[#allocation10 + $0x18] sm:$0xff]  ;;  %v2403_v59 = vld [vmem:[%s4759_s9 + $0x38] sm:$0xff] }
 0x2d2   : > { %3764 = vmatprep.subr.bf16.mxu0 %v4240_v19  ;;  %3812 = vmatprep.subr.bf16.mxu1 %v4240_v19  ;;  %v3831_v63 = vpack.c.bf16 %v1951_v62, %v1950_v60  ;;  %v2402_v58 = vld [vmem:[%s4759_s9 + $0x30] sm:$0xff]  ;;  %v2045_v62 = vld [vmem:[#allocation10 + $0xc8] sm:$0xff] }
 0x2d5   : > { %3766 = vmatpush3.bf16.msra.mxu0 %v3765_v3  ;;  %3814 = vmatpush3.bf16.msra.mxu1 %v3813_v4  ;;  %v1954_v3 = vld [vmem:[#allocation10 + $0x30] sm:$0xff]  ;;  %v1955_v4 = vld [vmem:[#allocation10 + $0x38] sm:$0xff] }
 0x2d6   : > { %3767 = vmatprep.subr.bf16.mxu0 %v4240_v19  ;;  %3815 = vmatprep.subr.bf16.mxu1 %v4240_v19  ;;  %v3837_v5 = vpack.c.bf16 %v1955_v4, %v1954_v3  ;;  %v2046_v3 = vld [vmem:[#allocation10 + $0xd0] sm:$0xff]  ;;  %v2047_v4 = vld [vmem:[#allocation10 + $0xd8] sm:$0xff] }
 0x2d9   : > { %3769 = vmatpush3.bf16.msra.mxu0 %v3768_v9  ;;  %3817 = vmatpush3.bf16.msra.mxu1 %v3816_v10  ;;  %v1958_v9 = vld [vmem:[#allocation10 + $0x50] sm:$0xff]  ;;  %v1959_v10 = vld [vmem:[#allocation10 + $0x58] sm:$0xff] }
 0x2da   : > { %3770 = vmatprep.subr.bf16.mxu0 %v4240_v19  ;;  %3818 = vmatprep.subr.bf16.mxu1 %v4240_v19  ;;  %v3843_v11 = vpack.c.bf16 %v1959_v10, %v1958_v9  ;;  %v2048_v9 = vld [vmem:[#allocation10 + $0xe0] sm:$0xff]  ;;  %v2049_v10 = vld [vmem:[#allocation10 + $0xe8] sm:$0xff] }
 0x2dd   : > { %3772 = vmatpush3.bf16.msra.mxu0 %v3771_v15  ;;  %3820 = vmatpush3.bf16.msra.mxu1 %v3819_v16  ;;  %v1962_v15 = vld [vmem:[#allocation10 + $0x70] sm:$0xff]  ;;  %v1963_v16 = vld [vmem:[#allocation10 + $0x78] sm:$0xff] }
 0x2de   : > { %3773 = vmatprep.subr.bf16.mxu0 %v4240_v19  ;;  %3821 = vmatprep.subr.bf16.mxu1 %v4240_v19  ;;  %v3849_v17 = vpack.c.bf16 %v1963_v16, %v1962_v15  ;;  %v2050_v15 = vld [vmem:[#allocation10 + $0xf0] sm:$0xff]  ;;  %v2051_v16 = vld [vmem:[#allocation10 + $0xf8] sm:$0xff] }
 0x2e1   : > { %3775 = vmatpush3.bf16.msra.mxu0 %v3774_v22  ;;  %3823 = vmatpush3.bf16.msra.mxu1 %v3822_v23 }
 0x2e2   : > { %3776 = vmatprep.subr.bf16.mxu0 %v4240_v19  ;;  %3824 = vmatprep.subr.bf16.mxu1 %v4240_v19 }
 0x2e5   : > { %3778 = vmatpush3.bf16.msra.mxu0 %v3777_v28  ;;  %3826 = vmatpush3.bf16.msra.mxu1 %v3825_v29 }
 0x2e6   : > { %3779 = vmatprep.subr.bf16.mxu0 %v4240_v19  ;;  %3947 = vmatprep.subr.bf16.mxu1 %v4240_v19 }
 0x2e8   : > { %3265 = vmatmul.mubr.f32.vlgmr.msra.gmra.mrb[6].mxu0 %v1667_v36  ;;  %3335 = vmatmul.mubr.f32.vlgmr.msra.gmra.mrb[8].mxu1 %v1847_v37  ;;  %v2036_v37 = vld [vmem:[#allocation10 + $0x80] sm:$0xff] }
 0x2e9   : > { %3781 = vmatpush3.bf16.msra.mxu0 %v3780_v32  ;;  %3299 = vmatprep.mubr.msk.f32.mxu0 %vm4241_vm1, %v4242_v33  ;;  %v2640_v32 = vld [vmem:[%s4756_s6] ss:$0 sm:$0xff] }
 0x2ea   : > { %3782 = vmatprep.subr.bf16.mxu0 %v4240_v19  ;;  %3544 = vmatprep.mubr.msk.f32.mxu1 %vm4241_vm1, %v4242_v33 }
 0x2ed   : > { %3784 = vmatpush3.bf16.msra.mxu0 %v3783_v38  ;;  %v2037_v38 = vld [vmem:[#allocation10 + $0x88] sm:$0xff] }
 0x2ee   : > { %3785 = vmatprep.subr.bf16.mxu0 %v4240_v19  ;;  %v3852_v39 = vpack.c.bf16 %v2037_v38, %v2036_v37  ;;  %v2137_v37 = vld [vmem:[#allocation10 + $0x150] sm:$0xff]  ;;  %v2138_v38 = vld [vmem:[#allocation10 + $0x158] sm:$0xff] }
 0x2f1   : > { %3787 = vmatpush3.bf16.msra.mxu0 %v3786_v41  ;;  %v2039_v41 = vld [vmem:[#allocation10 + $0x98] sm:$0xff] }
 0x2f2   : > { %3788 = vmatprep.subr.bf16.mxu0 %v4240_v19  ;;  %v3855_v45 = vpack.c.bf16 %v2039_v41, %v2038_v40  ;;  %v2139_v40 = vld [vmem:[#allocation10 + $0x160] sm:$0xff]  ;;  %v2140_v41 = vld [vmem:[#allocation10 + $0x168] sm:$0xff] }
 0x2f5   : > { %3790 = vmatpush3.bf16.msra.mxu0 %v3789_v44  ;;  %v2397_v44 = vld [vmem:[%s4759_s9 + $0x8] sm:$0xff] }
 0x2f6   : > { %3791 = vmatprep.subr.bf16.mxu0 %v4240_v19  ;;  %v3948_v46 = vpack.c.bf16 %v2397_v44, %v2396_v43  ;;  %v3894_v43 = vpack.c.bf16 %v2140_v41, %v2139_v40  ;;  %v2141_v44 = vld [vmem:[#allocation10 + $0x170] sm:$0xff] }
 0x2f8   : > { %3949 = vmatpush3.bf16.msra.mxu1 %v3948_v46 }
 0x2f9   : > { %3793 = vmatpush3.bf16.msra.mxu0 %v3792_v47  ;;  %v2398_v47 = vld [vmem:[%s4759_s9 + $0x10] sm:$0xff]  ;;  %3950 = vmatprep.subr.bf16.mxu1 %v4240_v19 }
 0x2fa   : > { %3794 = vmatprep.subr.bf16.mxu0 %v4240_v19  ;;  %v3951_v51 = vpack.c.bf16 %v2399_v48, %v2398_v47  ;;  %v2217_v47 = vld [vmem:[#allocation10 + $0x180] sm:$0xff]  ;;  %v2218_v48 = vld [vmem:[#allocation10 + $0x188] sm:$0xff] }
 0x2fc   : > { %3952 = vmatpush3.bf16.msra.mxu1 %v3951_v51  ;;  %v2219_v51 = vld [vmem:[#allocation10 + $0x190] sm:$0xff] }
 0x2fd   : > { %3796 = vmatpush3.bf16.msra.mxu0 %v3795_v50  ;;  %v2041_v50 = vld [vmem:[#allocation10 + $0xa8] sm:$0xff]  ;;  %3953 = vmatprep.subr.bf16.mxu1 %v4240_v19 }
 0x2fe   : > { %3797 = vmatprep.subr.bf16.mxu0 %v4240_v19  ;;  %v3858_v54 = vpack.c.bf16 %v2041_v50, %v2040_v49  ;;  %v3900_v49 = vpack.c.bf16 %v2218_v48, %v2217_v47 }
 0x301   : > { %3799 = vmatpush3.bf16.msra.mxu0 %v3798_v53  ;;  %v2401_v53 = vld [vmem:[%s4759_s9 + $0x28] sm:$0xff] }
 0x302   : > { %3800 = vmatprep.subr.bf16.mxu0 %v4240_v19 }
 0x305   : > { %3802 = vmatpush3.bf16.msra.mxu0 %v3801_v56  ;;  %v2043_v56 = vld [vmem:[#allocation10 + $0xb8] sm:$0xff] }
 0x306   : > { %3827 = vmatprep.subr.bf16.mxu0 %v4240_v19  ;;  %v3861_v60 = vpack.c.bf16 %v2043_v56, %v2042_v55  ;;  %v2222_v55 = vld [vmem:[#allocation10 + $0x1a8] sm:$0xff] }
 0x308   : > { %3300 = vmatmul.mubr.f32.vlgmr.msra.gmra.mrb[8].mxu0 %v1757_v57  ;;  %v3954_v57 = vpack.c.bf16 %v2401_v53, %v2400_v52  ;;  %v2220_v52 = vld [vmem:[#allocation10 + $0x198] sm:$0xff] }
 0x309   : > { %3369 = vmatprep.mubr.msk.f32.mxu0 %vm4241_vm1, %v4242_v33  ;;  %3829 = vmatpush3.bf16.msra.mxu0 %v3828_v61  ;;  %v2044_v61 = vld [vmem:[#allocation10 + $0xc0] sm:$0xff]  ;;  %v3903_v53 = vpack.c.bf16 %v2220_v52, %v2219_v51 }
 0x30a   : > { %3830 = vmatprep.subr.bf16.mxu0 %v4240_v19  ;;  %3955 = vmatpush3.bf16.msra.mxu1 %v3954_v57  ;;  %v2223_v57 = vld [vmem:[#allocation10 + $0x1b0] sm:$0xff] }
 0x30b   : > { %3956 = vmatprep.subr.bf16.mxu1 %v4240_v19 }
 0x30d   : > { %3832 = vmatpush3.bf16.msra.mxu0 %v3831_v63  ;;  %v3957_v63 = vpack.c.bf16 %v2403_v59, %v2402_v58  ;;  %v2224_v58 = vld [vmem:[#allocation10 + $0x1b8] sm:$0xff] }
 0x30e   : > { %3833 = vmatprep.subr.bf16.mxu0 %v4240_v19  ;;  %v3909_v59 = vpack.c.bf16 %v2224_v58, %v2223_v57 }
 0x30f   : > { %3958 = vmatpush3.bf16.msra.mxu1 %v3957_v63  ;;  %v2227_v63 = vld [vmem:[#allocation10 + $0x1d0] sm:$0xff] }
 0x310   : > { %3959 = vmatprep.subr.bf16.mxu1 %v4240_v19 }
 0x311   : > { %3835 = vmatpush3.bf16.msra.mxu0 %v3834_v2  ;;  %v3864_v2 = vpack.c.bf16 %v2045_v62, %v2044_v61  ;;  %v2226_v61 = vld [vmem:[#allocation10 + $0x1c8] sm:$0xff] }
 0x312   : > { %3836 = vmatprep.subr.bf16.mxu0 %v4240_v19 }
 0x315   : > { %3838 = vmatpush3.bf16.msra.mxu0 %v3837_v5  ;;  %v3960_v5 = vpack.c.bf16 %v2405_v1, %v2404_v0  ;;  %v2228_v0 = vld [vmem:[#allocation10 + $0x1d8] sm:$0xff] }
 0x316   : > { %3839 = vmatprep.subr.bf16.mxu0 %v4240_v19  ;;  %v3915_v1 = vpack.c.bf16 %v2228_v0, %v2227_v63 }
 0x317   : > { %3961 = vmatpush3.bf16.msra.mxu1 %v3960_v5  ;;  %v2231_v5 = vld [vmem:[#allocation10 + $0x1f0] sm:$0xff] }
 0x318   : > { %3962 = vmatprep.subr.bf16.mxu1 %v4240_v19 }
 0x319   : > { %3841 = vmatpush3.bf16.msra.mxu0 %v3840_v8  ;;  %v3867_v8 = vpack.c.bf16 %v2047_v4, %v2046_v3  ;;  %v2230_v3 = vld [vmem:[#allocation10 + $0x1e8] sm:$0xff] }
 0x31a   : > { %3842 = vmatprep.subr.bf16.mxu0 %v4240_v19 }
 0x31d   : > { %3844 = vmatpush3.bf16.msra.mxu0 %v3843_v11  ;;  %v3963_v11 = vpack.c.bf16 %v2407_v7, %v2406_v6  ;;  %v2232_v6 = vld [vmem:[#allocation10 + $0x1f8] sm:$0xff] }
 0x31e   : > { %3845 = vmatprep.subr.bf16.mxu0 %v4240_v19  ;;  %v3921_v7 = vpack.c.bf16 %v2232_v6, %v2231_v5 }
 0x31f   : > { %3964 = vmatpush3.bf16.msra.mxu1 %v3963_v11 }
 0x320   : > { %3965 = vmatprep.subr.bf16.mxu1 %v4240_v19 }
 0x321   : > { %3847 = vmatpush3.bf16.msra.mxu0 %v3846_v14  ;;  %v3870_v14 = vpack.c.bf16 %v2049_v10, %v2048_v9  ;;  %v2308_v9 = vld [vmem:[#allocation10 + $0x208] sm:$0xff] }
 0x322   : > { %3848 = vmatprep.subr.bf16.mxu0 %v4240_v19 }
 0x325   : > { %3850 = vmatpush3.bf16.msra.mxu0 %v3849_v17  ;;  %v3966_v17 = vpack.c.bf16 %v2409_v13, %v2408_v12  ;;  %v2309_v12 = vld [vmem:[#allocation10 + $0x210] sm:$0xff]  ;;  %v2310_v13 = vld [vmem:[#allocation10 + $0x218] sm:$0xff] }
 0x326   : > { %3851 = vmatprep.subr.bf16.mxu0 %v4240_v19 }
 0x327   : > { %3967 = vmatpush3.bf16.msra.mxu1 %v3966_v17 }
 0x328   : > { %3968 = vmatprep.subr.bf16.mxu1 %v4240_v19 }
 0x39b   : > { %v1592_v18 = vpop.f32.mrb[6].mxu1  ;;  %v1662_v20 = vpop.f32.mrb[4].mxu0 }
 0x39c   : > { %v1663_v21 = vadd.f32 %v1662_v20, %v1592_v18  ;;  %v3196_v22 = vpop.f32.mrb[7].mxu1  ;;  %v3231_v23 = vpop.f32.mrb[5].mxu0  ;;  %v3873_v18 = vpack.c.bf16 %v2051_v16, %v2050_v15  ;;  %v2127_v20 = vld [vmem:[#allocation10 + $0x100] sm:$0xff]  ;;  %v2312_v16 = vld [vmem:[#allocation10 + $0x228] sm:$0xff] }
 0x39d   : > { %v2311_v15 = vld [vmem:[#allocation10 + $0x220] sm:$0xff] }
 0x39e   : > { %v3930_v17 = vpack.c.bf16 %v2312_v16, %v2311_v15 }
 0x3bb   : > { %v1751_v24 = vpop.f32.mrb[6].mxu0  ;;  %v1931_v25 = vpop.f32.mrb[8].mxu1 }
 0x3bc   : > { %v1755_v26 = vadd.f32 %v1751_v24, %v1663_v21  ;;  %v3266_v27 = vpop.f32.mrb[7].mxu0  ;;  %v3336_v28 = vpop.f32.mrb[9].mxu1  ;;  %v2128_v21 = vld [vmem:[#allocation10 + $0x108] sm:$0xff]  ;;  %v2129_v24 = vld [vmem:[#allocation10 + $0x110] sm:$0xff] }
 0x3bd   : > { %v3876_v22 = vpack.c.bf16 %v2128_v21, %v2127_v20  ;;  %v2131_v27 = vld [vmem:[#allocation10 + $0x120] sm:$0xff]  ;;  %v2132_v28 = vld [vmem:[#allocation10 + $0x128] sm:$0xff]  ;;  %v2314_v20 = vld [vmem:[#allocation10 + $0x238] sm:$0xff] }
 0x3db   : > { %v1841_v29 = vpop.f32.mrb[8].mxu0 }
 0x3dc   : > { %v1845_v30 = vadd.f32 %v1841_v29, %v1755_v26  ;;  %v3301_v31 = vpop.f32.mrb[9].mxu0  ;;  %v3882_v29 = vpack.c.bf16 %v2132_v28, %v2131_v27  ;;  %v2319_v27 = vld [vmem:[#allocation10 + $0x260] sm:$0xff]  ;;  %v2320_v28 = vld [vmem:[#allocation10 + $0x268] sm:$0xff] }
 0x3dd   : > { %v2134_v31 = vld [vmem:[#allocation10 + $0x138] sm:$0xff] }
 0x3de   : > { %v1935_v34 = vadd.f32 %v1931_v25, %v1845_v30  ;;  %v2130_v25 = vld [vmem:[#allocation10 + $0x118] sm:$0xff]  ;;  %v2133_v30 = vld [vmem:[#allocation10 + $0x130] sm:$0xff] }
 0x3df   : > { %v3879_v26 = vpack.c.bf16 %v2130_v25, %v2129_v24  ;;  %v2318_v25 = vld [vmem:[#allocation10 + $0x258] sm:$0xff] }
 0x3e0   : > { %v1943_v35 = vadd.f32 %v2640_v32, %v1935_v34  ;;  %v3885_v32 = vpack.c.bf16 %v2134_v31, %v2133_v30  ;;  %v2135_v34 = vld [vmem:[#allocation10 + $0x140] sm:$0xff]  ;;  %v2321_v30 = vld [vmem:[#allocation10 + $0x270] sm:$0xff]  ;;  %v2322_v31 = vld [vmem:[#allocation10 + $0x278] sm:$0xff] }
 0x3e2   : > { %v1944_v36 = vmax.f32 %v1943_v35, 0.0  ;;  %v2136_v35 = vld [vmem:[#allocation10 + $0x148] sm:$0xff] }
 0x3e4   : > { %1945 = vst [vmem:[#allocation4] sm:$0x1f] %v1944_v36  ;;  %v3888_v36 = vpack.c.bf16 %v2136_v35, %v2135_v34  ;;  %v2410_v35 = vld [vmem:[%s4759_s9 + $0x70] sm:$0xff] }
 0x3eb   : > { %v4596_v42 = vld [vmem:[#allocation4] sm:$0x1f] }
 0x3ec   : > { %3370 = vmatmul.mubr.f32.vlgmr.msra.gmra.mrb[10].mxu0 %v4596_v42  ;;  %v2053_v23 = vrot.slane %v4596_v42, 1  ;;  %v2143_v50 = vrot.slane %v4596_v42, 2  ;;  %v2233_v11 = vrot.slane %v4596_v42, 3  ;;  %v2323_v34 = vrot.slane %v4596_v42, 4  ;;  %v2412_v42 = vld [vmem:[%s4760_s10] sm:$0x1] }
 0x3ed   : > { %3853 = vmatpush3.bf16.msra.mxu0 %v3852_v39  ;;  %3404 = vmatprep.mubr.msk.f32.mxu0 %vm4241_vm1, %v4242_v33  ;;  %v3891_v39 = vpack.c.bf16 %v2138_v38, %v2137_v37  ;;  %v1947_v38 = vld [vmem:[%s4758_s8] sm:$0x1] }
 0x3ee   : > { %3854 = vmatprep.subr.bf16.mxu0 %v4240_v19 }
 0x3f1   : > { %3856 = vmatpush3.bf16.msra.mxu0 %v3855_v45  ;;  %v2142_v45 = vld [vmem:[#allocation10 + $0x178] sm:$0xff] }
 0x3f2   : > { %3857 = vmatprep.subr.bf16.mxu0 %v4240_v19  ;;  %v3897_v46 = vpack.c.bf16 %v2142_v45, %v2141_v44 }
 0x3f5   : > { %3859 = vmatpush3.bf16.msra.mxu0 %v3858_v54  ;;  %v2221_v54 = vld [vmem:[#allocation10 + $0x1a0] sm:$0xff] }
 0x3f6   : > { %3860 = vmatprep.subr.bf16.mxu0 %v4240_v19  ;;  %v3906_v56 = vpack.c.bf16 %v2222_v55, %v2221_v54 }
 0x3f9   : > { %3862 = vmatpush3.bf16.msra.mxu0 %v3861_v60  ;;  %v2225_v60 = vld [vmem:[#allocation10 + $0x1c0] sm:$0xff] }
 0x3fa   : > { %3863 = vmatprep.subr.bf16.mxu0 %v4240_v19  ;;  %v3912_v62 = vpack.c.bf16 %v2226_v61, %v2225_v60 }
 0x3fd   : > { %3865 = vmatpush3.bf16.msra.mxu0 %v3864_v2  ;;  %v2229_v2 = vld [vmem:[#allocation10 + $0x1e0] sm:$0xff] }
 0x3fe   : > { %3866 = vmatprep.subr.bf16.mxu0 %v4240_v19  ;;  %v3918_v4 = vpack.c.bf16 %v2230_v3, %v2229_v2 }
 0x401   : > { %3868 = vmatpush3.bf16.msra.mxu0 %v3867_v8  ;;  %v2307_v8 = vld [vmem:[#allocation10 + $0x200] sm:$0xff] }
 0x402   : > { %3869 = vmatprep.subr.bf16.mxu0 %v4240_v19  ;;  %v3924_v10 = vpack.c.bf16 %v2308_v9, %v2307_v8 }
 0x405   : > { %3871 = vmatpush3.bf16.msra.mxu0 %v3870_v14  ;;  %v3927_v14 = vpack.c.bf16 %v2310_v13, %v2309_v12 }
 0x406   : > { %3872 = vmatprep.subr.bf16.mxu0 %v4240_v19 }
 0x409   : > { %3874 = vmatpush3.bf16.msra.mxu0 %v3873_v18  ;;  %v2313_v18 = vld [vmem:[#allocation10 + $0x230] sm:$0xff] }
 0x40a   : > { %3875 = vmatprep.subr.bf16.mxu0 %v4240_v19  ;;  %v3933_v21 = vpack.c.bf16 %v2314_v20, %v2313_v18 }
 0x40c   : > { %3405 = vmatmul.mubr.f32.vlgmr.msra.gmra.mrb[10].mxu0 %v2053_v23  ;;  %v2316_v23 = vld [vmem:[#allocation10 + $0x248] sm:$0xff] }
 0x40d   : > { %3877 = vmatpush3.bf16.msra.mxu0 %v3876_v22  ;;  %3439 = vmatprep.mubr.msk.f32.mxu0 %vm4241_vm1, %v4242_v33  ;;  %v2315_v22 = vld [vmem:[#allocation10 + $0x240] sm:$0xff] }
 0x40e   : > { %3878 = vmatprep.subr.bf16.mxu0 %v4240_v19  ;;  %v3936_v24 = vpack.c.bf16 %v2316_v23, %v2315_v22 }
 0x411   : > { %3880 = vmatpush3.bf16.msra.mxu0 %v3879_v26 }
 0x412   : > { %3881 = vmatprep.subr.bf16.mxu0 %v4240_v19 }
 0x415   : > { %3883 = vmatpush3.bf16.msra.mxu0 %v3882_v29  ;;  %v3942_v29 = vpack.c.bf16 %v2320_v28, %v2319_v27 }
 0x416   : > { %3884 = vmatprep.subr.bf16.mxu0 %v4240_v19 }
 0x419   : > { %3886 = vmatpush3.bf16.msra.mxu0 %v3885_v32  ;;  %v3945_v32 = vpack.c.bf16 %v2322_v31, %v2321_v30 }
 0x41a   : > { %3887 = vmatprep.subr.bf16.mxu0 %v4240_v19 }
 0x41d   : > { %3889 = vmatpush3.bf16.msra.mxu0 %v3888_v36  ;;  %v2411_v36 = vld [vmem:[%s4759_s9 + $0x78] sm:$0xff] }
 0x41e   : > { %3890 = vmatprep.subr.bf16.mxu0 %v4240_v19  ;;  %v3969_v37 = vpack.c.bf16 %v2411_v36, %v2410_v35 }
 0x420   : > { %3970 = vmatpush3.bf16.msra.mxu1 %v3969_v37 }
 0x421   : > { %3892 = vmatpush3.bf16.msra.mxu0 %v3891_v39 }
 0x422   : > { %3893 = vmatprep.subr.bf16.mxu0 %v4240_v19 }
 0x425   : > { %3895 = vmatpush3.bf16.msra.mxu0 %v3894_v43 }
 0x426   : > { %3896 = vmatprep.subr.bf16.mxu0 %v4240_v19 }
 0x429   : > { %3898 = vmatpush3.bf16.msra.mxu0 %v3897_v46 }
 0x42a   : > { %3899 = vmatprep.subr.bf16.mxu0 %v4240_v19 }
 0x42c   : > { %3440 = vmatmul.mubr.f32.vlgmr.msra.gmra.mrb[10].mxu0 %v2143_v50 }
 0x42d   : > { %3901 = vmatpush3.bf16.msra.mxu0 %v3900_v49  ;;  %3474 = vmatprep.mubr.msk.f32.mxu0 %vm4241_vm1, %v4242_v33 }
 0x42e   : > { %3902 = vmatprep.subr.bf16.mxu0 %v4240_v19 }
 0x431   : > { %3904 = vmatpush3.bf16.msra.mxu0 %v3903_v53 }
 0x432   : > { %3905 = vmatprep.subr.bf16.mxu0 %v4240_v19 }
 0x435   : > { %3907 = vmatpush3.bf16.msra.mxu0 %v3906_v56 }
 0x436   : > { %3908 = vmatprep.subr.bf16.mxu0 %v4240_v19 }
 0x439   : > { %3910 = vmatpush3.bf16.msra.mxu0 %v3909_v59 }
 0x43a   : > { %3911 = vmatprep.subr.bf16.mxu0 %v4240_v19 }
 0x43d   : > { %3913 = vmatpush3.bf16.msra.mxu0 %v3912_v62 }
 0x43e   : > { %3914 = vmatprep.subr.bf16.mxu0 %v4240_v19 }
 0x441   : > { %3916 = vmatpush3.bf16.msra.mxu0 %v3915_v1 }
 0x442   : > { %3917 = vmatprep.subr.bf16.mxu0 %v4240_v19 }
 0x445   : > { %3919 = vmatpush3.bf16.msra.mxu0 %v3918_v4 }
 0x446   : > { %3920 = vmatprep.subr.bf16.mxu0 %v4240_v19 }
 0x449   : > { %3922 = vmatpush3.bf16.msra.mxu0 %v3921_v7 }
 0x44a   : > { %3923 = vmatprep.subr.bf16.mxu0 %v4240_v19 }
 0x44c   : > { %3475 = vmatmul.mubr.f32.vlgmr.msra.gmra.mrb[10].mxu0 %v2233_v11 }
 0x44d   : > { %3925 = vmatpush3.bf16.msra.mxu0 %v3924_v10  ;;  %3509 = vmatprep.mubr.msk.f32.mxu0 %vm4241_vm1, %v4242_v33  ;;  %v2317_v33 = vld [vmem:[#allocation10 + $0x250] sm:$0xff] }
 0x44e   : > { %3926 = vmatprep.subr.bf16.mxu0 %v4240_v19  ;;  %v3939_v26 = vpack.c.bf16 %v2318_v25, %v2317_v33 }
 0x451   : > { %3928 = vmatpush3.bf16.msra.mxu0 %v3927_v14 }
 0x452   : > { %3929 = vmatprep.subr.bf16.mxu0 %v4240_v19 }
 0x455   : > { %3931 = vmatpush3.bf16.msra.mxu0 %v3930_v17 }
 0x456   : > { %3932 = vmatprep.subr.bf16.mxu0 %v4240_v19 }
 0x459   : > { %3934 = vmatpush3.bf16.msra.mxu0 %v3933_v21 }
 0x45a   : > { %3935 = vmatprep.subr.bf16.mxu0 %v4240_v19 }
 0x45d   : > { %3937 = vmatpush3.bf16.msra.mxu0 %v3936_v24 }
 0x45e   : > { %3938 = vmatprep.subr.bf16.mxu0 %v4240_v19 }
 0x461   : > { %3940 = vmatpush3.bf16.msra.mxu0 %v3939_v26 }
 0x462   : > { %3941 = vmatprep.subr.bf16.mxu0 %v4240_v19 }
 0x465   : > { %3943 = vmatpush3.bf16.msra.mxu0 %v3942_v29 }
 0x466   : > { %3944 = vmatprep.subr.bf16.mxu0 %v4240_v19 }
 0x469   : > { %3946 = vmatpush3.bf16.msra.mxu0 %v3945_v32 }
 0x46c   : > { %3510 = vmatmul.mubr.f32.vlgmr.msra.gmra.mrb[10].mxu0 %v2323_v34 }
 0x53f   : > { %v2391_v39 = vpop.f32.mrb[10].mxu0 }
 0x540   : > { %v3975_v19 = vadd.f32 %v2391_v39, %v1947_v38  ;;  %v3511_v40 = vpop.f32.mrb[11].mxu0 }
 0x542   : > { %3545 = vmatmul.mubr.f32.vlgmr.msra.gmra.mrb[10].mxu1 %v3975_v19 }
 0x615   : > { %v2479_v41 = vpop.f32.mrb[10].mxu1 }
 0x616   : > { %v2480_v43 = vadd.f32 %v2479_v41, %v2412_v42  ;;  %v3546_v44 = vpop.f32.mrb[11].mxu1 }
 0x618   : > { %2483 = vst [vmem:[%s422_s28] sm:$0x1] %v2480_v43 }
 0x619   : > { %4176 = shalt.err (!%p4173_p9)
}
 0x61a   : > { %s4177_s13 = scalar_lea.hbm %s4708_s19, 16  ;;  %s4181_s24 = scalar_lea.hbm %s4789_s16, 32 }
 0x61b   : > { %p4178_p2 = scmp.ne.s32.totalorder %s4708_s19, %s4177_s13  ;;  %p4182_p5 = scmp.lt.u32.totalorder %s4708_s19, %s4789_s16 }
 0x61c   : > { %p4183_p10 = scmp.lt.u32.totalorder %s4181_s24, %s4177_s13  ;;  %p4185_p12 = scmp.lt.u32.totalorder %s4177_s13, %s4708_s19 }
 0x61d   : > { %p4179_p0 = pnand %p4178_p2, %p4790_p7 }
 0x61e   : > { %p4184_p4 = por %p4183_p10, %p4182_p5 }
 0x61f   : > { %p4180_p3 = pneg %p4179_p0 }
 0x620   : > { %p4186_p8 = por %p4185_p12, %p4184_p4 }
 0x622   : > { %p4187_p11 = pnand %p4186_p8, %p4180_p3 }
 0x624   : > { %4190 = shalt.err (!%p4187_p11)
}
 0x625   : > { %4016 = dma.vmem_to_hbm [thread:$0]  (%p4790_p7), %s4710_s25, 16, %s4708_s19, %s2485_s12  }
 0x626 PF: > { %s4791_s20 = sld [smem:[#allocation17_spill]]  ;;  %s4792_s28 = sld [smem:[#allocation15_spill]] }
 0x627   : > { %s4793_s30 = sld [smem:[#allocation20_spill]] }
 0x62c   : > { %p4038_p13 = scmp.ge.s32.totalorder %s4791_s20, 2  ;;  %s2509_s14 = sand.u32 1, %s4792_s28  }
 0x62d   : > { %p4794_p1 = scmp.ne.s32.totalorder %s4793_s30, 0  ;;  %s2510_s15 = scalar_lea.sflag [#allocation7], %s2509_s14 }
 0x62f   : > { %p4029_p6 = pnand %p4038_p13, %p4794_p1 }
 0x631   : > { %4216 = dma.done.wait (!%p4029_p6), %s2510_s15, 16  }
 0x632   : > { %4218 = vsyncadd (!%p4029_p6), %s2510_s15, 4294967280  ;;  %s4795_s20 = sld [smem:[#allocation18_spill]]  ;;  %s4796_s21 = sld [smem:[#allocation16_spill]] }
 0x633   : > { %s4797_s19 = sld [smem:[#allocation19_spill]]  ;;  %s4798_s17 = smov %s4225_s18 }
 0x638   : > { %p23_p9 = scmp.ge.s32.totalorder %s4795_s20, 4   ;;  %s4799_s18 = smov %s4796_s21 }
 0x63a   :  { %25 = sbr.rel (!%p23_p9) target bundleno = 7 (0x7), region = 160 }
 0x641   :  { %2514 = vsyncpa [#allocation6], 1 }
 0x642   :  { %2516 = vsyncpa [#allocation6 + $0x1], 1 }
 0x643   :  { %2517 = vsyncpa [#allocation9], 1 }
 0x644   :  { %2518 = vsyncpa [#allocation7], 1 }
 0x645   :  { %2520 = vsyncpa [#allocation7 + $0x1], 1 }

</bundles_post_ra>
